<compile_context>
chip_gen: v5e
topology: v5e:2x2
jax: 0.10.0
libtpu: 0.0.40
codegen_flags: <defaults>
</compile_context>

<pallas_src>
import functools

import jax
import jax.numpy as jnp
from jax.experimental import pallas as pl
from jax.experimental.pallas import tpu as pltpu

# ----- model config (DetrConfig-equivalent, small synthetic sizes) -----
BATCH = 2
SEQ = 16
D_MODEL = 32
NUM_HEADS = 4
HEAD_DIM = D_MODEL // NUM_HEADS
FFN_DIM = 64
LN_EPS = 1e-5
SCALE = HEAD_DIM ** -0.5

# rows of the packed small-parameter slab (one DMA instead of ten)
_R_BQK, _R_BV, _R_BO, _R_G1, _R_BE1, _R_B1, _R_B2, _R_G2, _R_BE2 = range(9)
_SLAB_ROWS = 9


def _layer_norm(x, gamma, beta):
    mu = jnp.mean(x, axis=-1, keepdims=True)
    var = jnp.mean((x - mu) ** 2, axis=-1, keepdims=True)
    return (x - mu) * jax.lax.rsqrt(var + LN_EPS) * gamma + beta


def detr_encoder_layer_kernel(
    hid_ref, pos_ref, mask_ref,
    wqk_ref, wv_ref, wo_ref, w1_ref, w2_ref, slab_ref,
    out_ref, *, num_heads, head_dim, d_model, ffn_dim,
):
    H, hd, D, F = num_heads, head_dim, d_model, ffn_dim

    h = hid_ref[...]                      # (S, D) f32 — one batch element per grid step
    hp = h + pos_ref[...]                 # query/key get position embeddings, value does not
    mask = mask_ref[...]                  # (S, S) additive mask f32

    def vec(row, width):                  # static (1, width) slice of the packed param slab
        return slab_ref[row:row + 1, :width]

    bqk = vec(_R_BQK, 2 * D)
    bv, bo = vec(_R_BV, D), vec(_R_BO, D)
    g1, be1 = vec(_R_G1, D), vec(_R_BE1, D)
    b1, b2 = vec(_R_B1, F), vec(_R_B2, D)
    g2, be2 = vec(_R_G2, D), vec(_R_BE2, D)

    # ---- fused Q|K projection (scale pre-folded into W_q/b_q) and V projection ----
    # bf16 operands into the MXU, f32 accumulation; biases added once in f32.
    qk = jnp.dot(hp.astype(jnp.bfloat16), wqk_ref[...],
                 preferred_element_type=jnp.float32) + bqk        # (S, 2D) f32
    v = jnp.dot(h.astype(jnp.bfloat16), wv_ref[...],
                preferred_element_type=jnp.float32) + bv          # (S, D) f32

    # ---- head-major (H, S, hd) operands: static lane slices + leading-axis stacks
    #      (no in-kernel minor-dim reshape), done once, outside any compute loop ----
    qh = jnp.stack([qk[:, i * hd:(i + 1) * hd] for i in range(H)]).astype(jnp.bfloat16)
    kh = jnp.stack([qk[:, D + i * hd:D + (i + 1) * hd] for i in range(H)]).astype(jnp.bfloat16)
    vh = jnp.stack([v[:, i * hd:(i + 1) * hd] for i in range(H)]).astype(jnp.bfloat16)

    # ---- all heads in one batched dot_general; mask added once ----
    s = jnp.einsum("hqd,hkd->hqk", qh, kh,
                   preferred_element_type=jnp.float32)            # (H, S, S) f32
    s = s + mask[None, :, :]
    s = s - jnp.max(s, axis=-1, keepdims=True)
    p = jnp.exp(s)                                                # f32 softmax (v5e: no bf16 EUP)
    p = p * pl.reciprocal(jnp.sum(p, axis=-1, keepdims=True), approx=True)

    ctx = jnp.einsum("hqk,hkd->hqd", p.astype(jnp.bfloat16), vh,
                     preferred_element_type=jnp.float32)          # (H, S, hd) f32

    # ---- output projection: one batched dot over heads + reduce (== ctx_2d @ W_o) ----
    attn = jnp.einsum("hqd,hdf->hqf", ctx.astype(jnp.bfloat16), wo_ref[...],
                      preferred_element_type=jnp.float32)         # (H, S, D)
    attn = jnp.sum(attn, axis=0) + bo                             # (S, D)

    # ---- residual + LayerNorm 1 (f32) ----
    x = _layer_norm(h + attn, g1, be1)

    # ---- FFN (ReLU activation, DETR default) ----
    f = jnp.dot(x.astype(jnp.bfloat16), w1_ref[...],
                preferred_element_type=jnp.float32) + b1
    f = jnp.maximum(f, 0.0)
    f = jnp.dot(f.astype(jnp.bfloat16), w2_ref[...],
                preferred_element_type=jnp.float32) + b2

    # ---- residual + LayerNorm 2 (f32) ----
    y = _layer_norm(x + f, g2, be2)
    out_ref[...] = y.astype(out_ref.dtype)


def detr_encoder_layer(hidden, mask, pos, params):
    """hidden: (B, S, D) f32; mask: (B, 1, S, S) additive; pos: (B, S, D) f32."""
    B, S, D = hidden.shape
    H = NUM_HEADS
    hd = D // H
    F = params["w1"].shape[1]

    # ---- host-side parameter prep ----
    # Q|K fused weight with the attention scale folded into W_q / b_q (exact same math).
    wqk = jnp.concatenate([params["wq"] * SCALE, params["wk"]], axis=1).astype(jnp.bfloat16)
    wv = params["wv"].astype(jnp.bfloat16)
    wo_h = params["wo"].reshape(H, hd, D).astype(jnp.bfloat16)     # head-major output proj
    w1 = params["w1"].astype(jnp.bfloat16)
    w2 = params["w2"].astype(jnp.bfloat16)

    # pack all (1, D)/(1, F)/(1, 2D) vectors into one f32 slab → single DMA
    W = max(2 * D, F)

    def row(vrow):
        return jnp.pad(vrow, ((0, 0), (0, W - vrow.shape[1])))

    slab = jnp.concatenate([
        row(jnp.concatenate([params["bq"] * SCALE, params["bk"]], axis=1)),  # bqk
        row(params["bv"]), row(params["bo"]),
        row(params["g1"]), row(params["beta1"]),
        row(params["b1"]), row(params["b2"]),
        row(params["g2"]), row(params["beta2"]),
    ], axis=0).astype(jnp.float32)                                 # (_SLAB_ROWS, W)

    # advisory cost estimate so XLA schedules around the custom call sensibly
    N = B * S
    flops = int(2 * N * D * 2 * D + 2 * N * D * D          # qk + v projections
                + 2 * 2 * B * H * S * S * hd                # scores + ctx
                + 2 * N * D * D                             # output projection
                + 2 * 2 * N * D * F)                        # FFN
    transcendentals = int(B * H * S * S + B * H * S + 2 * N)
    bytes_accessed = int(4 * (3 * N * D + B * S * S + _SLAB_ROWS * W)
                         + 2 * (2 * D * D + 2 * D * D + 2 * D * F))

    kernel = functools.partial(
        detr_encoder_layer_kernel,
        num_heads=H, head_dim=hd, d_model=D, ffn_dim=F)

    fn = pl.pallas_call(
        kernel,
        out_shape=jax.ShapeDtypeStruct((B, S, D), hidden.dtype),
        grid=(B,),
        in_specs=[
            pl.BlockSpec((None, S, D), lambda b: (b, 0, 0)),       # hidden
            pl.BlockSpec((None, S, D), lambda b: (b, 0, 0)),       # position embeddings
            pl.BlockSpec((None, S, S), lambda b: (b, 0, 0)),       # additive mask
            pl.BlockSpec((D, 2 * D), lambda b: (0, 0)),            # W_q|W_k (resident)
            pl.BlockSpec((D, D), lambda b: (0, 0)),                # W_v
            pl.BlockSpec((H, hd, D), lambda b: (0, 0, 0)),         # W_o head-major
            pl.BlockSpec((D, F), lambda b: (0, 0)),                # W_fc1
            pl.BlockSpec((F, D), lambda b: (0, 0)),                # W_fc2
            pl.BlockSpec((_SLAB_ROWS, W), lambda b: (0, 0)),       # packed bias/LN slab
        ],
        out_specs=pl.BlockSpec((None, S, D), lambda b: (b, 0, 0)),
        compiler_params=pltpu.CompilerParams(
            dimension_semantics=("parallel",)),                    # v7x: shard batch over TCs
        cost_estimate=pl.CostEstimate(
            flops=flops, transcendentals=transcendentals,
            bytes_accessed=bytes_accessed),
    )
    out = fn(hidden, pos, mask[:, 0], wqk, wv, wo_h, w1, w2, slab)
    return out


def reference_layer(hidden, mask, pos, p):
    """Pure-JAX f32 reference mirroring HF DetrEncoderLayer (eval mode)."""
    B, S, D = hidden.shape
    hp = hidden + pos
    q = (hp @ p["wq"] + p["bq"]) * SCALE
    k = hp @ p["wk"] + p["bk"]
    v = hidden @ p["wv"] + p["bv"]
    q = q.reshape(B, S, NUM_HEADS, HEAD_DIM).transpose(0, 2, 1, 3)
    k = k.reshape(B, S, NUM_HEADS, HEAD_DIM).transpose(0, 2, 1, 3)
    v = v.reshape(B, S, NUM_HEADS, HEAD_DIM).transpose(0, 2, 1, 3)
    scores = jnp.einsum("bhqd,bhkd->bhqk", q, k) + mask
    pw = jax.nn.softmax(scores, axis=-1)
    attn = jnp.einsum("bhqk,bhkd->bhqd", pw, v).transpose(0, 2, 1, 3).reshape(B, S, D)
    attn = attn @ p["wo"] + p["bo"]

    def ln(x, g, b):
        mu = x.mean(-1, keepdims=True)
        var = ((x - mu) ** 2).mean(-1, keepdims=True)
        return (x - mu) / jnp.sqrt(var + LN_EPS) * g + b

    x = ln(hidden + attn, p["g1"], p["beta1"])
    f = jnp.maximum(x @ p["w1"] + p["b1"], 0.0) @ p["w2"] + p["b2"]
    return ln(x + f, p["g2"], p["beta2"])


def init_params(key):
    ks = jax.random.split(key, 8)

    def lin(k, din, dout):
        # stored pre-transposed: (in, out), equivalent to torch Linear's W^T
        return 0.02 * jax.random.normal(k, (din, dout), jnp.float32)

    return {
        "wq": lin(ks[0], D_MODEL, D_MODEL), "bq": jnp.zeros((1, D_MODEL), jnp.float32),
        "wk": lin(ks[1], D_MODEL, D_MODEL), "bk": jnp.zeros((1, D_MODEL), jnp.float32),
        "wv": lin(ks[2], D_MODEL, D_MODEL), "bv": jnp.zeros((1, D_MODEL), jnp.float32),
        "wo": lin(ks[3], D_MODEL, D_MODEL), "bo": 0.01 * jnp.ones((1, D_MODEL), jnp.float32),
        "g1": jnp.ones((1, D_MODEL), jnp.float32), "beta1": jnp.zeros((1, D_MODEL), jnp.float32),
        "w1": lin(ks[4], D_MODEL, FFN_DIM), "b1": 0.01 * jnp.ones((1, FFN_DIM), jnp.float32),
        "w2": lin(ks[5], FFN_DIM, D_MODEL), "b2": 0.01 * jnp.ones((1, D_MODEL), jnp.float32),
        "g2": jnp.ones((1, D_MODEL), jnp.float32), "beta2": jnp.zeros((1, D_MODEL), jnp.float32),
    }


if __name__ == "__main__":
    key = jax.random.PRNGKey(0)
    k_h, k_p, k_w = jax.random.split(key, 3)

    hidden = jax.random.normal(k_h, (BATCH, SEQ, D_MODEL), jnp.float32)
    pos = jax.random.normal(k_p, (BATCH, SEQ, D_MODEL), jnp.float32)

    # additive attention mask (batch, 1, tgt, src): mask out last 2 source tokens of batch 1
    mask = jnp.zeros((BATCH, 1, SEQ, SEQ), jnp.float32)
    mask = mask.at[1, :, :, SEQ - 2:].set(-1e9)

    params = init_params(k_w)

    out = detr_encoder_layer(hidden, mask, pos, params)
    out = jax.block_until_ready(out)

    ref = reference_layer(hidden, mask, pos, params)
    assert out.shape == (BATCH, SEQ, D_MODEL)
    # tolerance covers bf16 MXU inputs (f32 accumulation) + EUP approximate reciprocal
    assert jnp.allclose(out, ref, atol=5e-3, rtol=5e-3), "mismatch vs JAX reference"

    print("KERNEL_OK")
</pallas_src>

<mosaic_0001>
module attributes {stable_mosaic.version = 11 : i64} {
  func.func @detr_encoder_layer_kernel(%arg0: i32, %arg1: memref<1x16x32xf32, #tpu.memory_space<vmem>>, %arg2: memref<1x16x32xf32, #tpu.memory_space<vmem>>, %arg3: memref<1x16x16xf32, #tpu.memory_space<vmem>>, %arg4: memref<32x64xbf16, #tpu.memory_space<vmem>>, %arg5: memref<32x32xbf16, #tpu.memory_space<vmem>>, %arg6: memref<4x8x32xbf16, #tpu.memory_space<vmem>>, %arg7: memref<32x64xbf16, #tpu.memory_space<vmem>>, %arg8: memref<64x32xbf16, #tpu.memory_space<vmem>>, %arg9: memref<9x64xf32, #tpu.memory_space<vmem>>, %arg10: memref<1x16x32xf32, #tpu.memory_space<vmem>>) attributes {dimension_semantics = [#tpu.dimension_semantics<parallel>], iteration_bounds = array<i64: 2>, scalar_prefetch = 0 : i64, scratch_operands = 0 : i64, tpu.core_type = #tpu.core_type<tc>, window_params = [{transform_indices = @transform_0, window_bounds = array<i64: 1, 16, 32>}, {transform_indices = @transform_1, window_bounds = array<i64: 1, 16, 32>}, {transform_indices = @transform_2, window_bounds = array<i64: 1, 16, 16>}, {pipeline_mode = #tpu.pipeline_mode<synchronous>, transform_indices = @transform_3, window_bounds = array<i64: 32, 64>}, {pipeline_mode = #tpu.pipeline_mode<synchronous>, transform_indices = @transform_4, window_bounds = array<i64: 32, 32>}, {pipeline_mode = #tpu.pipeline_mode<synchronous>, transform_indices = @transform_5, window_bounds = array<i64: 4, 8, 32>}, {pipeline_mode = #tpu.pipeline_mode<synchronous>, transform_indices = @transform_6, window_bounds = array<i64: 32, 64>}, {pipeline_mode = #tpu.pipeline_mode<synchronous>, transform_indices = @transform_7, window_bounds = array<i64: 64, 32>}, {pipeline_mode = #tpu.pipeline_mode<synchronous>, transform_indices = @transform_8, window_bounds = array<i64: 9, 64>}, {transform_indices = @transform_9, window_bounds = array<i64: 1, 16, 32>}]} {
    %c0 = arith.constant 0 : index
    %c0_0 = arith.constant 0 : index
    %c0_1 = arith.constant 0 : index
    %0 = vector.load %arg1[%c0, %c0_0, %c0_1] : memref<1x16x32xf32, #tpu.memory_space<vmem>>, vector<1x16x32xf32>
    %1 = vector.shape_cast %0 : vector<1x16x32xf32> to vector<16x32xf32>
    %c0_2 = arith.constant 0 : index
    %c0_3 = arith.constant 0 : index
    %c0_4 = arith.constant 0 : index
    %2 = vector.load %arg2[%c0_2, %c0_3, %c0_4] : memref<1x16x32xf32, #tpu.memory_space<vmem>>, vector<1x16x32xf32>
    %3 = vector.shape_cast %2 : vector<1x16x32xf32> to vector<16x32xf32>
    %4 = arith.addf %1, %3 : vector<16x32xf32>
    %c0_5 = arith.constant 0 : index
    %c0_6 = arith.constant 0 : index
    %c0_7 = arith.constant 0 : index
    %5 = vector.load %arg3[%c0_5, %c0_6, %c0_7] : memref<1x16x16xf32, #tpu.memory_space<vmem>>, vector<1x16x16xf32>
    %6 = vector.shape_cast %5 : vector<1x16x16xf32> to vector<16x16xf32>
    %c0_8 = arith.constant 0 : index
    %c0_9 = arith.constant 0 : index
    %7 = vector.load %arg9[%c0_8, %c0_9] : memref<9x64xf32, #tpu.memory_space<vmem>>, vector<1x64xf32>
    %c1 = arith.constant 1 : index
    %c0_10 = arith.constant 0 : index
    %8 = vector.load %arg9[%c1, %c0_10] : memref<9x64xf32, #tpu.memory_space<vmem>>, vector<1x32xf32>
    %c2 = arith.constant 2 : index
    %c0_11 = arith.constant 0 : index
    %9 = vector.load %arg9[%c2, %c0_11] : memref<9x64xf32, #tpu.memory_space<vmem>>, vector<1x32xf32>
    %c3 = arith.constant 3 : index
    %c0_12 = arith.constant 0 : index
    %10 = vector.load %arg9[%c3, %c0_12] : memref<9x64xf32, #tpu.memory_space<vmem>>, vector<1x32xf32>
    %c4 = arith.constant 4 : index
    %c0_13 = arith.constant 0 : index
    %11 = vector.load %arg9[%c4, %c0_13] : memref<9x64xf32, #tpu.memory_space<vmem>>, vector<1x32xf32>
    %c5 = arith.constant 5 : index
    %c0_14 = arith.constant 0 : index
    %12 = vector.load %arg9[%c5, %c0_14] : memref<9x64xf32, #tpu.memory_space<vmem>>, vector<1x64xf32>
    %c6 = arith.constant 6 : index
    %c0_15 = arith.constant 0 : index
    %13 = vector.load %arg9[%c6, %c0_15] : memref<9x64xf32, #tpu.memory_space<vmem>>, vector<1x32xf32>
    %c7 = arith.constant 7 : index
    %c0_16 = arith.constant 0 : index
    %14 = vector.load %arg9[%c7, %c0_16] : memref<9x64xf32, #tpu.memory_space<vmem>>, vector<1x32xf32>
    %c8 = arith.constant 8 : index
    %c0_17 = arith.constant 0 : index
    %15 = vector.load %arg9[%c8, %c0_17] : memref<9x64xf32, #tpu.memory_space<vmem>>, vector<1x32xf32>
    %16 = arith.truncf %4 : vector<16x32xf32> to vector<16x32xbf16>
    %c0_18 = arith.constant 0 : index
    %c0_19 = arith.constant 0 : index
    %17 = vector.load %arg4[%c0_18, %c0_19] : memref<32x64xbf16, #tpu.memory_space<vmem>>, vector<32x64xbf16>
    %cst = arith.constant dense<0.000000e+00> : vector<16x64xf32>
    %18 = tpu.matmul %16, %17, %cst {dimension_numbers = #tpu.dot_dimension_numbers<[1], [0], [0], [1], [0, 0, 1, 1], [], []>} : vector<16x32xbf16>, vector<32x64xbf16>, vector<16x64xf32> -> vector<16x64xf32>
    %19 = vector.broadcast %7 : vector<1x64xf32> to vector<16x64xf32>
    %20 = arith.addf %18, %19 : vector<16x64xf32>
    %21 = arith.truncf %1 : vector<16x32xf32> to vector<16x32xbf16>
    %c0_20 = arith.constant 0 : index
    %c0_21 = arith.constant 0 : index
    %22 = vector.load %arg5[%c0_20, %c0_21] : memref<32x32xbf16, #tpu.memory_space<vmem>>, vector<32x32xbf16>
    %cst_22 = arith.constant dense<0.000000e+00> : vector<16x32xf32>
    %23 = tpu.matmul %21, %22, %cst_22 {dimension_numbers = #tpu.dot_dimension_numbers<[1], [0], [0], [1], [0, 0, 1, 1], [], []>} : vector<16x32xbf16>, vector<32x32xbf16>, vector<16x32xf32> -> vector<16x32xf32>
    %24 = vector.broadcast %8 : vector<1x32xf32> to vector<16x32xf32>
    %25 = arith.addf %23, %24 : vector<16x32xf32>
    %26 = vector.extract_strided_slice %20 {offsets = [0, 0], sizes = [16, 8], strides = [1, 1]} : vector<16x64xf32> to vector<16x8xf32>
    %27 = vector.extract_strided_slice %20 {offsets = [0, 8], sizes = [16, 8], strides = [1, 1]} : vector<16x64xf32> to vector<16x8xf32>
    %28 = vector.extract_strided_slice %20 {offsets = [0, 16], sizes = [16, 8], strides = [1, 1]} : vector<16x64xf32> to vector<16x8xf32>
    %29 = vector.extract_strided_slice %20 {offsets = [0, 24], sizes = [16, 8], strides = [1, 1]} : vector<16x64xf32> to vector<16x8xf32>
    %30 = vector.shape_cast %26 : vector<16x8xf32> to vector<1x16x8xf32>
    %31 = vector.shape_cast %27 : vector<16x8xf32> to vector<1x16x8xf32>
    %32 = vector.shape_cast %28 : vector<16x8xf32> to vector<1x16x8xf32>
    %33 = vector.shape_cast %29 : vector<16x8xf32> to vector<1x16x8xf32>
    %34 = tpu.concatenate %30, %31, %32, %33 in 0 : vector<1x16x8xf32>, vector<1x16x8xf32>, vector<1x16x8xf32>, vector<1x16x8xf32> -> vector<4x16x8xf32>
    %35 = arith.truncf %34 : vector<4x16x8xf32> to vector<4x16x8xbf16>
    %36 = vector.extract_strided_slice %20 {offsets = [0, 32], sizes = [16, 8], strides = [1, 1]} : vector<16x64xf32> to vector<16x8xf32>
    %37 = vector.extract_strided_slice %20 {offsets = [0, 40], sizes = [16, 8], strides = [1, 1]} : vector<16x64xf32> to vector<16x8xf32>
    %38 = vector.extract_strided_slice %20 {offsets = [0, 48], sizes = [16, 8], strides = [1, 1]} : vector<16x64xf32> to vector<16x8xf32>
    %39 = vector.extract_strided_slice %20 {offsets = [0, 56], sizes = [16, 8], strides = [1, 1]} : vector<16x64xf32> to vector<16x8xf32>
    %40 = vector.shape_cast %36 : vector<16x8xf32> to vector<1x16x8xf32>
    %41 = vector.shape_cast %37 : vector<16x8xf32> to vector<1x16x8xf32>
    %42 = vector.shape_cast %38 : vector<16x8xf32> to vector<1x16x8xf32>
    %43 = vector.shape_cast %39 : vector<16x8xf32> to vector<1x16x8xf32>
    %44 = tpu.concatenate %40, %41, %42, %43 in 0 : vector<1x16x8xf32>, vector<1x16x8xf32>, vector<1x16x8xf32>, vector<1x16x8xf32> -> vector<4x16x8xf32>
    %45 = arith.truncf %44 : vector<4x16x8xf32> to vector<4x16x8xbf16>
    %46 = vector.extract_strided_slice %25 {offsets = [0, 0], sizes = [16, 8], strides = [1, 1]} : vector<16x32xf32> to vector<16x8xf32>
    %47 = vector.extract_strided_slice %25 {offsets = [0, 8], sizes = [16, 8], strides = [1, 1]} : vector<16x32xf32> to vector<16x8xf32>
    %48 = vector.extract_strided_slice %25 {offsets = [0, 16], sizes = [16, 8], strides = [1, 1]} : vector<16x32xf32> to vector<16x8xf32>
    %49 = vector.extract_strided_slice %25 {offsets = [0, 24], sizes = [16, 8], strides = [1, 1]} : vector<16x32xf32> to vector<16x8xf32>
    %50 = vector.shape_cast %46 : vector<16x8xf32> to vector<1x16x8xf32>
    %51 = vector.shape_cast %47 : vector<16x8xf32> to vector<1x16x8xf32>
    %52 = vector.shape_cast %48 : vector<16x8xf32> to vector<1x16x8xf32>
    %53 = vector.shape_cast %49 : vector<16x8xf32> to vector<1x16x8xf32>
    %54 = tpu.concatenate %50, %51, %52, %53 in 0 : vector<1x16x8xf32>, vector<1x16x8xf32>, vector<1x16x8xf32>, vector<1x16x8xf32> -> vector<4x16x8xf32>
    %55 = arith.truncf %54 : vector<4x16x8xf32> to vector<4x16x8xbf16>
    "tpu.trace_start"() <{level = 10 : i32, message = "hqd,hkd->hqk"}> : () -> ()
    %cst_23 = arith.constant dense<0.000000e+00> : vector<4x16x16xf32>
    %56 = tpu.matmul %35, %45, %cst_23 {dimension_numbers = #tpu.dot_dimension_numbers<[2], [2], [1], [1], [0, 0, 0, 1, 1, 1], [0], [0]>} : vector<4x16x8xbf16>, vector<4x16x8xbf16>, vector<4x16x16xf32> -> vector<4x16x16xf32>
    "tpu.trace_stop"() : () -> ()
    %57 = vector.shape_cast %6 : vector<16x16xf32> to vector<1x16x16xf32>
    %58 = vector.broadcast %57 : vector<1x16x16xf32> to vector<4x16x16xf32>
    %59 = arith.addf %56, %58 : vector<4x16x16xf32>
    %cst_24 = arith.constant dense<0xFF800000> : vector<4x16xf32>
    %60 = vector.multi_reduction <maximumf>, %59, %cst_24 [2] : vector<4x16x16xf32> to vector<4x16xf32>
    %61 = vector.shape_cast %60 : vector<4x16xf32> to vector<4x16x1xf32>
    %62 = vector.broadcast %61 : vector<4x16x1xf32> to vector<4x16x16xf32>
    %63 = arith.subf %59, %62 : vector<4x16x16xf32>
    %64 = math.exp %63 : vector<4x16x16xf32>
    %cst_25 = arith.constant dense<0.000000e+00> : vector<4x16xf32>
    %65 = vector.multi_reduction <add>, %64, %cst_25 [2] : vector<4x16x16xf32> to vector<4x16xf32>
    %66 = vector.shape_cast %65 : vector<4x16xf32> to vector<4x16x1xf32>
    %67 = tpu.reciprocal %66 {approx = true} : vector<4x16x1xf32> -> vector<4x16x1xf32>
    %68 = vector.broadcast %67 : vector<4x16x1xf32> to vector<4x16x16xf32>
    %69 = arith.mulf %64, %68 : vector<4x16x16xf32>
    %70 = arith.truncf %69 : vector<4x16x16xf32> to vector<4x16x16xbf16>
    "tpu.trace_start"() <{level = 10 : i32, message = "hqk,hkd->hqd"}> : () -> ()
    %cst_26 = arith.constant dense<0.000000e+00> : vector<4x16x8xf32>
    %71 = tpu.matmul %70, %55, %cst_26 {dimension_numbers = #tpu.dot_dimension_numbers<[2], [1], [1], [2], [0, 0, 0, 1, 1, 2], [0], [0]>} : vector<4x16x16xbf16>, vector<4x16x8xbf16>, vector<4x16x8xf32> -> vector<4x16x8xf32>
    "tpu.trace_stop"() : () -> ()
    %72 = arith.truncf %71 : vector<4x16x8xf32> to vector<4x16x8xbf16>
    %c0_27 = arith.constant 0 : index
    %c0_28 = arith.constant 0 : index
    %c0_29 = arith.constant 0 : index
    %73 = vector.load %arg6[%c0_27, %c0_28, %c0_29] : memref<4x8x32xbf16, #tpu.memory_space<vmem>>, vector<4x8x32xbf16>
    "tpu.trace_start"() <{level = 10 : i32, message = "hqd,hdf->hqf"}> : () -> ()
    %cst_30 = arith.constant dense<0.000000e+00> : vector<4x16x32xf32>
    %74 = tpu.matmul %72, %73, %cst_30 {dimension_numbers = #tpu.dot_dimension_numbers<[2], [1], [1], [2], [0, 0, 0, 1, 1, 2], [0], [0]>} : vector<4x16x8xbf16>, vector<4x8x32xbf16>, vector<4x16x32xf32> -> vector<4x16x32xf32>
    "tpu.trace_stop"() : () -> ()
    %cst_31 = arith.constant dense<0.000000e+00> : vector<16x32xf32>
    %75 = vector.multi_reduction <add>, %74, %cst_31 [0] : vector<4x16x32xf32> to vector<16x32xf32>
    %76 = vector.broadcast %9 : vector<1x32xf32> to vector<16x32xf32>
    %77 = arith.addf %75, %76 : vector<16x32xf32>
    %78 = arith.addf %1, %77 : vector<16x32xf32>
    %cst_32 = arith.constant dense<0.000000e+00> : vector<16xf32>
    %79 = vector.multi_reduction <add>, %78, %cst_32 [1] : vector<16x32xf32> to vector<16xf32>
    %80 = vector.shape_cast %79 : vector<16xf32> to vector<16x1xf32>
    %cst_33 = arith.constant 3.200000e+01 : f32
    %81 = vector.broadcast %cst_33 : f32 to vector<16x1xf32>
    %82 = arith.divf %80, %81 : vector<16x1xf32>
    %83 = vector.broadcast %82 : vector<16x1xf32> to vector<16x32xf32>
    %84 = arith.subf %78, %83 : vector<16x32xf32>
    %85 = arith.mulf %84, %84 : vector<16x32xf32>
    %cst_34 = arith.constant dense<0.000000e+00> : vector<16xf32>
    %86 = vector.multi_reduction <add>, %85, %cst_34 [1] : vector<16x32xf32> to vector<16xf32>
    %87 = vector.shape_cast %86 : vector<16xf32> to vector<16x1xf32>
    %cst_35 = arith.constant 3.200000e+01 : f32
    %88 = vector.broadcast %cst_35 : f32 to vector<16x1xf32>
    %89 = arith.divf %87, %88 : vector<16x1xf32>
    %90 = vector.broadcast %82 : vector<16x1xf32> to vector<16x32xf32>
    %91 = arith.subf %78, %90 : vector<16x32xf32>
    %cst_36 = arith.constant 9.99999974E-6 : f32
    %92 = vector.broadcast %cst_36 : f32 to vector<16x1xf32>
    %93 = arith.addf %89, %92 : vector<16x1xf32>
    %94 = math.rsqrt %93 : vector<16x1xf32>
    %95 = vector.broadcast %94 : vector<16x1xf32> to vector<16x32xf32>
    %96 = arith.mulf %91, %95 : vector<16x32xf32>
    %97 = vector.broadcast %10 : vector<1x32xf32> to vector<16x32xf32>
    %98 = arith.mulf %96, %97 : vector<16x32xf32>
    %99 = vector.broadcast %11 : vector<1x32xf32> to vector<16x32xf32>
    %100 = arith.addf %98, %99 : vector<16x32xf32>
    %101 = arith.truncf %100 : vector<16x32xf32> to vector<16x32xbf16>
    %c0_37 = arith.constant 0 : index
    %c0_38 = arith.constant 0 : index
    %102 = vector.load %arg7[%c0_37, %c0_38] : memref<32x64xbf16, #tpu.memory_space<vmem>>, vector<32x64xbf16>
    %cst_39 = arith.constant dense<0.000000e+00> : vector<16x64xf32>
    %103 = tpu.matmul %101, %102, %cst_39 {dimension_numbers = #tpu.dot_dimension_numbers<[1], [0], [0], [1], [0, 0, 1, 1], [], []>} : vector<16x32xbf16>, vector<32x64xbf16>, vector<16x64xf32> -> vector<16x64xf32>
    %104 = vector.broadcast %12 : vector<1x64xf32> to vector<16x64xf32>
    %105 = arith.addf %103, %104 : vector<16x64xf32>
    %cst_40 = arith.constant 0.000000e+00 : f32
    %106 = vector.broadcast %cst_40 : f32 to vector<16x64xf32>
    %107 = arith.maximumf %105, %106 : vector<16x64xf32>
    %108 = arith.truncf %107 : vector<16x64xf32> to vector<16x64xbf16>
    %c0_41 = arith.constant 0 : index
    %c0_42 = arith.constant 0 : index
    %109 = vector.load %arg8[%c0_41, %c0_42] : memref<64x32xbf16, #tpu.memory_space<vmem>>, vector<64x32xbf16>
    %cst_43 = arith.constant dense<0.000000e+00> : vector<16x32xf32>
    %110 = tpu.matmul %108, %109, %cst_43 {dimension_numbers = #tpu.dot_dimension_numbers<[1], [0], [0], [1], [0, 0, 1, 1], [], []>} : vector<16x64xbf16>, vector<64x32xbf16>, vector<16x32xf32> -> vector<16x32xf32>
    %111 = vector.broadcast %13 : vector<1x32xf32> to vector<16x32xf32>
    %112 = arith.addf %110, %111 : vector<16x32xf32>
    %113 = arith.addf %100, %112 : vector<16x32xf32>
    %cst_44 = arith.constant dense<0.000000e+00> : vector<16xf32>
    %114 = vector.multi_reduction <add>, %113, %cst_44 [1] : vector<16x32xf32> to vector<16xf32>
    %115 = vector.shape_cast %114 : vector<16xf32> to vector<16x1xf32>
    %cst_45 = arith.constant 3.200000e+01 : f32
    %116 = vector.broadcast %cst_45 : f32 to vector<16x1xf32>
    %117 = arith.divf %115, %116 : vector<16x1xf32>
    %118 = vector.broadcast %117 : vector<16x1xf32> to vector<16x32xf32>
    %119 = arith.subf %113, %118 : vector<16x32xf32>
    %120 = arith.mulf %119, %119 : vector<16x32xf32>
    %cst_46 = arith.constant dense<0.000000e+00> : vector<16xf32>
    %121 = vector.multi_reduction <add>, %120, %cst_46 [1] : vector<16x32xf32> to vector<16xf32>
    %122 = vector.shape_cast %121 : vector<16xf32> to vector<16x1xf32>
    %cst_47 = arith.constant 3.200000e+01 : f32
    %123 = vector.broadcast %cst_47 : f32 to vector<16x1xf32>
    %124 = arith.divf %122, %123 : vector<16x1xf32>
    %125 = vector.broadcast %117 : vector<16x1xf32> to vector<16x32xf32>
    %126 = arith.subf %113, %125 : vector<16x32xf32>
    %cst_48 = arith.constant 9.99999974E-6 : f32
    %127 = vector.broadcast %cst_48 : f32 to vector<16x1xf32>
    %128 = arith.addf %124, %127 : vector<16x1xf32>
    %129 = math.rsqrt %128 : vector<16x1xf32>
    %130 = vector.broadcast %129 : vector<16x1xf32> to vector<16x32xf32>
    %131 = arith.mulf %126, %130 : vector<16x32xf32>
    %132 = vector.broadcast %14 : vector<1x32xf32> to vector<16x32xf32>
    %133 = arith.mulf %131, %132 : vector<16x32xf32>
    %134 = vector.broadcast %15 : vector<1x32xf32> to vector<16x32xf32>
    %135 = arith.addf %133, %134 : vector<16x32xf32>
    %c0_49 = arith.constant 0 : index
    %c0_50 = arith.constant 0 : index
    %c0_51 = arith.constant 0 : index
    %136 = vector.load %arg10[%c0_49, %c0_50, %c0_51] : memref<1x16x32xf32, #tpu.memory_space<vmem>>, vector<1x16x32xf32>
    %137 = vector.shape_cast %136 : vector<1x16x32xf32> to vector<16x32xf32>
    %138 = vector.shape_cast %135 : vector<16x32xf32> to vector<1x16x32xf32>
    tpu.vector_store %arg10[%c0_49, %c0_50, %c0_51], %138 {strides = array<i32>} : memref<1x16x32xf32, #tpu.memory_space<vmem>>, vector<1x16x32xf32>,
    return
  }
  func.func @transform_0(%arg0: i32) -> (i32, i32, i32) {
    %c0_i32 = arith.constant 0 : i32
    %c0_i32_0 = arith.constant 0 : i32
    %c0_i32_1 = arith.constant 0 : i32
    return %arg0, %c0_i32, %c0_i32_0 : i32, i32, i32
  }
  func.func @transform_1(%arg0: i32) -> (i32, i32, i32) {
    %c0_i32 = arith.constant 0 : i32
    %c0_i32_0 = arith.constant 0 : i32
    %c0_i32_1 = arith.constant 0 : i32
    return %arg0, %c0_i32, %c0_i32_0 : i32, i32, i32
  }
  func.func @transform_2(%arg0: i32) -> (i32, i32, i32) {
    %c0_i32 = arith.constant 0 : i32
    %c0_i32_0 = arith.constant 0 : i32
    %c0_i32_1 = arith.constant 0 : i32
    return %arg0, %c0_i32, %c0_i32_0 : i32, i32, i32
  }
  func.func @transform_3(%arg0: i32) -> (i32, i32) {
    %c0_i32 = arith.constant 0 : i32
    %c0_i32_0 = arith.constant 0 : i32
    %c0_i32_1 = arith.constant 0 : i32
    return %c0_i32, %c0_i32_0 : i32, i32
  }
  func.func @transform_4(%arg0: i32) -> (i32, i32) {
    %c0_i32 = arith.constant 0 : i32
    %c0_i32_0 = arith.constant 0 : i32
    %c0_i32_1 = arith.constant 0 : i32
    return %c0_i32, %c0_i32_0 : i32, i32
  }
  func.func @transform_5(%arg0: i32) -> (i32, i32, i32) {
    %c0_i32 = arith.constant 0 : i32
    %c0_i32_0 = arith.constant 0 : i32
    %c0_i32_1 = arith.constant 0 : i32
    %c0_i32_2 = arith.constant 0 : i32
    return %c0_i32, %c0_i32_0, %c0_i32_1 : i32, i32, i32
  }
  func.func @transform_6(%arg0: i32) -> (i32, i32) {
    %c0_i32 = arith.constant 0 : i32
    %c0_i32_0 = arith.constant 0 : i32
    %c0_i32_1 = arith.constant 0 : i32
    return %c0_i32, %c0_i32_0 : i32, i32
  }
  func.func @transform_7(%arg0: i32) -> (i32, i32) {
    %c0_i32 = arith.constant 0 : i32
    %c0_i32_0 = arith.constant 0 : i32
    %c0_i32_1 = arith.constant 0 : i32
    return %c0_i32, %c0_i32_0 : i32, i32
  }
  func.func @transform_8(%arg0: i32) -> (i32, i32) {
    %c0_i32 = arith.constant 0 : i32
    %c0_i32_0 = arith.constant 0 : i32
    %c0_i32_1 = arith.constant 0 : i32
    return %c0_i32, %c0_i32_0 : i32, i32
  }
  func.func @transform_9(%arg0: i32) -> (i32, i32, i32) {
    %c0_i32 = arith.constant 0 : i32
    %c0_i32_0 = arith.constant 0 : i32
    %c0_i32_1 = arith.constant 0 : i32
    return %arg0, %c0_i32, %c0_i32_0 : i32, i32, i32
  }
}

</mosaic_0001>

<bundles_post_ra>
// kernel: tpu_custom_call.1
= control target key start
LH: loop header
LB: loop body
LE: loop exit
PB: predicated region body
PF: predicated region fallthrough
CT: control target
= control target key end

     0   :  { %s2400_s0 = inlined_call_operand.vmem [shape: f32[2,16,32], index: 0, kind: input, shape index: {}]   ;;  %s2401_s1 = inlined_call_operand.hbm [shape: f32[2,16,32], index: 1, kind: input, shape index: {}]   ;;  %s2402_s2 = inlined_call_operand.hbm [shape: f32[2,16,16], index: 2, kind: input, shape index: {}]   ;;  %s2403_s3 = inlined_call_operand.vmem [shape: bf16[32,64], index: 3, kind: input, shape index: {}]   ;;  %s2404_s4 = inlined_call_operand.hbm [shape: bf16[32,32], index: 4, kind: input, shape index: {}]   ;;  %s2405_s5 = inlined_call_operand.hbm [shape: bf16[4,8,32], index: 5, kind: input, shape index: {}]   ;;  %s2406_s6 = inlined_call_operand.hbm [shape: bf16[32,64], index: 6, kind: input, shape index: {}]   ;;  %s2407_s7 = inlined_call_operand.vmem [shape: bf16[64,32], index: 7, kind: input, shape index: {}]   ;;  %s2408_s8 = inlined_call_operand.hbm [shape: f32[9,64], index: 8, kind: input, shape index: {}]   ;;  %s2409_s9 = inlined_call_operand.hbm [shape: f32[2,16,32], index: 9, kind: output, shape index: {}]  }
   0x1   :  { %2417 = sst [smem:[#allocation23_spill]] %s2401_s1 }
   0x2   :  { %2418 = sst [smem:[#allocation24_spill]] %s2404_s4 }
   0x3   :  { %2419 = sst [smem:[#allocation25_spill]] %s2405_s5 }
   0x4   :  { %2420 = sst [smem:[#allocation26_spill]] %s2406_s6 }
   0x5   :  { %2421 = sst [smem:[#allocation27_spill]] %s2408_s8 }
   0x6   :  { %14 = vsyncpa [#allocation3], 0 }
   0x7   :  { %16 = vsyncpa [#allocation3 + $0x1], 0 }
   0x8   :  { %17 = vsyncpa [#allocation6], 0 }
   0x9   :  { %19 = vsyncpa [#allocation6 + $0x1], 0 }
   0xa   :  { %20 = vsyncpa [#allocation9], 0 }
   0xb   :  { %21 = vsyncpa [#allocation12], 0 }
   0xc   :  { %22 = vsyncpa [#allocation4], 0 }
   0xd   :  { %24 = vsyncpa [#allocation4 + $0x1], 0  ;;  %s2049_s30 = smov 0   ;;  %s2051_s10 = smov 0  }
   0xe   :  { %s2053_s11 = smov 0   ;;  %s2055_s12 = smov 0  }
   0xf LB: > { %2422 = sst [smem:[#allocation20_spill]] %s1978_s11  ;;  %s2070_s13 = sadd.s32 4294967295, %s1982_s12   ;;  %s1982_s12 = sphi %s2055_s12, %s2439_s12   ;;  %s1978_s11 = sphi %s2053_s11, %s2441_s11   ;;  %s1974_s10 = sphi %s2051_s10, %s2443_s10   ;;  %s1970_s30 = sphi %s2049_s30, %s2442_s30  }
  0x10   : > { %s1438_s14 = sadd.s32 4294967294, %s1982_s12   ;;  %p76_p0 = scmp.ne.s32.totalorder %s1974_s10, %s1970_s30 }
  0x11   : > { %p77_p1 = scmp.eq.s32.totalorder %s2070_s13, 0  ;;  %p252_p2 = scmp.eq.s32.totalorder %s2070_s13, 1 }
  0x12   : > { %p258_p3 = scmp.eq.s32.totalorder %s1438_s14, 1  ;;  %p1439_p5 = scmp.ge.s32.totalorder %s1982_s12, 1 }
  0x13   : > { %p2079_p4 = por %p77_p1, %p76_p0  ;;  %p265_p7 = scmp.lt.s32.totalorder %s1982_s12, 3 }
  0x14   : > { %p2084_p6 = por %p258_p3, %p76_p0  ;;  %s2425_s4 = sld [smem:[#allocation24_spill]] }
  0x15   : > { %p2092_p8 = pnand %p1439_p5, %p265_p7  ;;  %s1984_s21 = smov [#allocation7]  }
  0x16   : > { %s281_s22 = sshll.u32 %s1984_s21, 4  ;;  %s2428_s5 = sld [smem:[#allocation25_spill]]  ;;  %s282_s22 = int_to_ptr.vmem [resolvable:$true] %s281_s22 }
  0x17   : > { %p1558_p9 = pneg %p2092_p8  ;;  %s1985_s27 = smov 64  }
  0x18   : > { %s1986_s28 = smov 4   ;;  %s1987_s29 = smov [#allocation8]  }
  0x19   : > { %p2100_p10 = pnand %p1558_p9, %p77_p1  ;;  %s295_s14 = sshll.u32 %s1987_s29, 4  ;;  %s296_s14 = int_to_ptr.vmem [resolvable:$true] %s295_s14 }
  0x1a   : > { %s279_s19 = sshll.u32 %s2425_s4, 4  ;;  %s2429_s6 = sld [smem:[#allocation26_spill]]  ;;  %s280_s19 = int_to_ptr.hbm [resolvable:$true] %s279_s19 }
  0x1b   : > { %1561 = dma.hbm_to_vmem [thread:$0]  (!%p2100_p10), %s280_s19, 256, %s282_s22, [#allocation6], %s1985_s27, %s1985_s27, %s1986_s28  }
  0x1c   : > { %s293_s26 = sshll.u32 %s2428_s5, 4  ;;  %s2430_s8 = sld [smem:[#allocation27_spill]]  ;;  %s294_s26 = int_to_ptr.hbm [resolvable:$true] %s293_s26 }
  0x1d   : > { %1564 = dma.hbm_to_vmem [thread:$0]  (!%p2100_p10), %s294_s26, 256, %s296_s14, [#allocation9], %s1985_s27, %s1985_s27, %s1986_s28  }
  0x1e   : > { %s1988_s19 = smov [#allocation10]   ;;  %s1989_s29 = smov [#allocation11]  }
  0x1f   : > { %s309_s22 = sshll.u32 %s1988_s19, 4  ;;  %s326_s26 = sshll.u32 %s1989_s29, 4  ;;  %s310_s22 = int_to_ptr.vmem [resolvable:$true] %s309_s22  ;;  %s327_s26 = int_to_ptr.vmem [resolvable:$true] %s326_s26 }
  0x20   : > { %s307_s21 = sshll.u32 %s2429_s6, 4  ;;  %s2410_s14 = smov 128   ;;  %s308_s21 = int_to_ptr.hbm [resolvable:$true] %s307_s21 }
  0x21   : > { %1567 = dma.hbm_to_vmem [thread:$0]  (!%p2100_p10), %s308_s21, 256, %s310_s22, [#allocation9], %s1985_s27, %s1985_s27, %s1986_s28  }
  0x22   : > { %s324_s4 = sshll.u32 %s2430_s8, 4  ;;  %s2412_s17 = smov 8   ;;  %s325_s4 = int_to_ptr.hbm [resolvable:$true] %s324_s4 }
  0x23   : > { %1570 = dma.hbm_to_vmem [thread:$0]  (!%p2100_p10), %s325_s4, 256, %s327_s26, [#allocation12], %s2410_s14, %s2410_s14, %s2412_s17  }
  0x24   : > { %s2126_s18 = sadd.s32 1, %s1982_s12   ;;  %s63_s25 = sadd.s32 1, %s1978_s11 }
  0x25   : > { %2431 = sst [smem:[#allocation21_spill]] %s2126_s18  ;;  %s60_s24 = ssub.s32 %s1982_s12, %s2126_s18 }
  0x26   : > { %p61_p12 = scmp.eq.s32.totalorder %s60_s24, 0  ;;  %p70_p13 = scmp.ne.s32.totalorder %s1978_s11, %s1974_s10 }
  0x27   : > { %p71_p0 = scmp.eq.s32.totalorder %s1982_s12, 0  ;;  %p1586_p7 = scmp.lt.s32.totalorder %s1982_s12, 2 }
  0x28   : > { %s2135_s27 = scalar_select %p61_p12, %s1978_s11, %s63_s25  }
  0x29   : > { %p72_p3 = por %p71_p0, %p70_p13  ;;  %p2139_p5 = por %p252_p2, %p70_p13 }
  0x2a   : > { %2432 = sst [smem:[#allocation22_spill]] %s2135_s27  ;;  %s348_s23 = sand.u32 1, %s1978_s11  }
  0x2b   : > { %s2145_s21 = sshll.u32 %s348_s23, 4  ;;  %s1522_s4 = sshll.u32 %s1982_s12, 4 }
  0x2c   : > { %s2434_s1 = sld [smem:[#allocation23_spill]]  ;;  %s352_s26 = scalar_lea.vmem [#allocation2], %s2145_s21 }
  0x2d   : > { %s360_s24 = sshll.u32 %s352_s26, 4  ;;  %p2152_p9 = pnand %p1586_p7, %p72_p3  ;;  %s361_s24 = int_to_ptr.vmem [resolvable:$true] %s360_s24 }
  0x2e   : > { %s379_s6 = scalar_lea.hbm %s2402_s2, %s1522_s4  ;;  %s349_s27 = scalar_lea.sflag [#allocation3], %s348_s23 }
  0x2f   : > { %s380_s8 = sshll.u32 %s379_s6, 4  ;;  %p1844_p10 = pneg %p2152_p9  ;;  %s381_s8 = int_to_ptr.hbm [resolvable:$true] %s380_s8 }
  0x32   : > { %s357_s29 = scalar_lea.hbm %s2434_s1, %s1522_s4  ;;  %s1847_s26 = scalar_lea.hbm %s2434_s1, 32 }
  0x33   : > { %s358_s25 = sshll.u32 %s357_s29, 4  ;;  %s359_s25 = int_to_ptr.hbm [resolvable:$true] %s358_s25 }
  0x34   : > { %s1840_s11 = sshra.s32 %s359_s25, 4  ;;  %s1841_s11 = int_to_ptr.hbm [resolvable:$true] %s1840_s11 }
  0x35   : > { %s1842_s19 = scalar_lea.hbm %s1841_s11, 16  ;;  %p1848_p0 = scmp.lt.s32.totalorder %s1841_s11, %s2434_s1 }
  0x36   : > { %p1843_p2 = scmp.ne.s32.totalorder %s1841_s11, %s1842_s19  ;;  %p1849_p3 = scmp.lt.s32.totalorder %s1847_s26, %s1842_s19 }
  0x38   : > { %p1845_p12 = pnand %p1844_p10, %p1843_p2  ;;  %p1850_p7 = por %p1849_p3, %p1848_p0 }
  0x3a   : > { %p1846_p13 = pneg %p1845_p12 }
  0x3c   : > { %p1851_p11 = pnand %p1850_p7, %p1846_p13 }
  0x3e   : > { %1854 = shalt.err (!%p1851_p11)
}
  0x3f   : > { %s2436_s6 = smov 8   ;;  %s2437_s23 = smov 128  }
  0x40   : > { %1574 = dma.hbm_to_vmem [thread:$0]  (!%p2152_p9), %s359_s25, 256, %s361_s24, %s349_s27, %s2437_s23, %s2437_s23, %s2436_s6  }
  0x41   : > { %s374_s4 = scalar_lea.vmem [#allocation5], %s2145_s21  ;;  %s370_s29 = sand.u32 1, %s1982_s12  }
  0x42   : > { %s382_s22 = sshll.u32 %s374_s4, 4  ;;  %s371_s5 = scalar_lea.sflag [#allocation6], %s370_s29  ;;  %s383_s22 = int_to_ptr.vmem [resolvable:$true] %s382_s22 }
  0x43   : > { %s1870_s11 = sshra.s32 %s381_s8, 4  ;;  %s1877_s1 = scalar_lea.hbm %s2402_s2, 32  ;;  %s1871_s11 = int_to_ptr.hbm [resolvable:$true] %s1870_s11 }
  0x44   : > { %s1872_s19 = scalar_lea.hbm %s1871_s11, 16  ;;  %p1878_p13 = scmp.lt.s32.totalorder %s1871_s11, %s2402_s2 }
  0x45   : > { %p1873_p2 = scmp.ne.s32.totalorder %s1871_s11, %s1872_s19  ;;  %p1879_p0 = scmp.lt.s32.totalorder %s1877_s1, %s1872_s19 }
  0x47   : > { %p1875_p11 = pnand %p1873_p2, %p1844_p10  ;;  %p1880_p3 = por %p1879_p0, %p1878_p13 }
  0x49   : > { %p1876_p12 = pneg %p1875_p11 }
  0x4b   : > { %p1881_p7 = pnand %p1880_p3, %p1876_p12 }
  0x4d   : > { %1884 = shalt.err (!%p1881_p7)
}
  0x4e   : > { %1577 = dma.hbm_to_vmem [thread:$0]  (!%p2152_p9), %s381_s8, 256, %s383_s22, %s371_s5, %s2437_s23, %s2437_s23, %s2436_s6  }
  0x4f   : > { %394 = sbr.rel (%p2092_p8) target bundleno = 2012 (0x7dc), region = 56  ;;  %s2194_s21 = sand.u32 (!%p2092_p8), 1, %s1974_s10  }
  0x50   : > { %s2197_s18 = sshll.u32 (!%p2092_p8), %s2194_s21, 4  ;;  %s397_s1 = scalar_lea.sflag (!%p2092_p8), [#allocation3], %s2194_s21 }
  0x51   : > { %s400_s24 = scalar_lea.vmem (!%p2092_p8), [#allocation2], %s2197_s18 }
  0x54   : > { %1945 = dma.done.wait (%p2079_p4), %s397_s1, 256  }
  0x55   : > { %1947 = vsyncadd (%p2079_p4), %s397_s1, 4294967040  ;;  %s406_s8 = sand.u32 1, %s2070_s13   ;;  %s410_s14 = scalar_lea.vmem [#allocation5], %s2197_s18 }
  0x56   : > { %s407_s20 = scalar_lea.sflag [#allocation6], %s406_s8 }
  0x57   : > { %1949 = dma.done.wait (%p2079_p4), %s407_s20, 256  }
  0x58   : > { %1951 = vsyncadd (%p2079_p4), %s407_s20, 4294967040 }
  0x59   : > { %1953 = dma.done.wait (%p77_p1), [#allocation6], 256  }
  0x5a   : > { %1955 = vsyncadd (%p77_p1), [#allocation6], 4294967040 }
  0x5b   : > { %1957 = dma.done.wait (%p77_p1), [#allocation9], 512  }
  0x5c   : > { %1959 = vsyncadd (%p77_p1), [#allocation9], 4294966784 }
  0x5d   : > { %1961 = dma.done.wait (%p77_p1), [#allocation12], 256  }
  0x5e   : > { %1963 = vsyncadd (%p77_p1), [#allocation12], 4294967040  ;;  %p476_p4 = scmp.lt.s32.totalorder %s2070_s13, 1  ;;  %v1526_v0 = vld [vmem:[%s2403_s3 + $0x8] sm:$0xff]  ;;  %v484_v3 = vld [vmem:[%s400_s24] sm:$0xff]  ;;  %vm517_vm0 = vcmask 261120  }
  0x5f   : > { %v485_v4 = vld [vmem:[%s400_s24 + $0x8] sm:$0xff]  ;;  %527 = vmatpush.bf16.msra.mxu0 %v1526_v0  ;;  %v1525_v5 = vld [vmem:[%s2403_s3] sm:$0xff]  ;;  %v1669_v10 = vld [vmem:[#allocation11] ss:$0 sm:$0xff]  ;;  %s1992_s19 = smov 104   ;;  %s1993_s26 = smov 120  }
  0x60   : > { %s477_s15 = scalar_select %p476_p4, %s2070_s13, 1  ;;  %vm633_vm1 = vcmask 64512   ;;  %v1528_v46 = vld [vmem:[#allocation7 + $0x8] sm:$0xff]  ;;  %v1527_v47 = vld [vmem:[#allocation7] sm:$0xff]  ;;  %vm735_vm2 = vcmask 130048   ;;  %vm964_vm3 = vcmask 1043456  }
  0x61   : > { %s1994_s17 = smov 112   ;;  %s1995_s27 = smov 96   ;;  %562 = vmatpush.bf16.msra.mxu1 %v1528_v46  ;;  %v488_v55 = vld [vmem:[%s410_s14] sm:$0xff]  ;;  %v489_v59 = vld [vmem:[%s410_s14 + $0x8] sm:$0xff]  ;;  %vm1204_vm11 = vcmask 523264  }
  0x62   : > { %s1524_s25 = sshll.u32 %s477_s15, 4  ;;  %v1670_v0 = vld [vmem:[#allocation11 + $0x1] ss:$0 sm:$0xff]  ;;  %s1535_s23 = sshll.u32 %s2070_s13, 4 }
  0x63   : > { %s480_s4 = scalar_lea.vmem %s2400_s0, %s1524_s25  ;;  %528 = vmatpush.bf16.msra.mxu0 %v1525_v5  ;;  %s1288_s29 = scalar_lea.hbm %s2409_s9, %s1535_s23 }
  0x64   : > { %v2231_v1 = vld [vmem:[%s480_s4] sm:$0xff]  ;;  %v2233_v2 = vld [vmem:[%s480_s4 + $0x8] sm:$0xff]  ;;  %s475_s5 = scalar_lea.vmem [#allocation13], %s2197_s18  ;;  %s1277_s13 = scalar_lea.sflag [#allocation4], %s2194_s21 }
  0x65   : > { %v486_v6 = vadd.f32 %v484_v3, %v2231_v1  ;;  %v487_v7 = vadd.f32 %v485_v4, %v2233_v2  ;;  %563 = vmatpush.bf16.msra.mxu1 %v1527_v47  ;;  %v535_v48 = vpack.c.bf16 %v2233_v2, %v2231_v1  ;;  %s1289_s11 = sshll.u32 %s475_s5, 4  ;;  %s1920_s1 = scalar_lea.hbm %s2409_s9, 32  ;;  %s1290_s11 = int_to_ptr.vmem [resolvable:$true] %s1289_s11 }
  0x67   : > { %v499_v8 = vpack.c.bf16 %v487_v7, %v486_v6 }
  0x68   : > { %1478 = vmatmul.msk.bf16.vlgmr.msra.gmra.mxu1 %vm517_vm0, %v535_v48 }
  0x69   : > { %1469 = vmatmul.msk.bf16.vlgmr.msra.gmra.mxu0 %vm517_vm0, %v499_v8 }
  0xe5   : > { %v565_v63 = vpop.f32.mrf.mxu1 }
  0xe6   : > { %v530_v9 = vpop.f32.mrf.mxu0  ;;  %v566_v3 = vadd.f32 %v1670_v0, %v565_v63 }
  0xe7   : > { %v531_v12 = vadd.f32 %v1669_v10, %v530_v9 }
  0xe8   : > { %v618_v6 = vpack.c.bf16 %v566_v3, %v566_v3 }
  0xe9   : > { %v590_v16 = vpack.c.bf16 %v531_v12, %v531_v12 }
  0xea   : > { %v839_v9 = vunpack.c.l.b16 %v618_v6 }
  0xeb   : > { %v628_v18 = vunpack.c.l.b16 %v590_v16 }
  0xed   : > { %v567_v4 = vpop.f32.mrf.mxu1 }
  0xee   : > { %v532_v11 = vpop.f32.mrf.mxu0  ;;  %v568_v5 = vadd.f32 %v1670_v0, %v567_v4 }
  0xef   : > { %v533_v13 = vadd.f32 %v1669_v10, %v532_v11 }
  0xf0   : > { %v619_v7 = vpack.c.bf16 %v568_v5, %v568_v5  ;;  %v2265_v8 = vpack.i.bf16 %v568_v5, %v566_v3 }
  0xf1   : > { %v1649_v14 = vpack.i.bf16 %v533_v13, %v531_v12  ;;  %v591_v15 = vpack.c.bf16 %v533_v13, %v533_v13 }
  0xf2   : > { %v840_v10 = vunpack.c.l.b16 %v619_v7 }
  0xf3   : > { %1650 = vrot.lane.b32.xlu1 %v1649_v14, %s1992_s19  ;;  %1640 = vrot.lane.b32.xlu0 %v1649_v14, %s1993_s26  ;;  %v629_v17 = vunpack.c.l.b16 %v591_v15 }
  0xf4   : > { %v841_v11 = vpack.c.b16 %v840_v10, %v839_v9 }
  0xf5   : > { %v630_v19 = vpack.c.b16 %v629_v17, %v628_v18 }
  0xfb   : > { %1645 = vrot.lane.b32.xlu0 %v1649_v14, %s1994_s17  ;;  %631 = vrot.lane.b32.xlu1 %v630_v19, %s1995_s27 }
 0x165   : > { %v1651_v20 = vpop.permute.xlu1 %1650  ;;  %v1641_v21 = vpop.permute.xlu0 %1640 }
 0x166   : > { %v1653_v22 = vunpack.i.h.bf16 %v1651_v20  ;;  %v1652_v23 = vunpack.i.l.bf16 %v1651_v20  ;;  %v1643_v24 = vunpack.i.h.bf16 %v1641_v21  ;;  %v1642_v25 = vunpack.i.l.bf16 %v1641_v21 }
 0x168   : > { %v597_v26 = vpack.c.bf16 %v1653_v22, %v1653_v22  ;;  %v596_v27 = vpack.c.bf16 %v1652_v23, %v1652_v23  ;;  %v593_v28 = vpack.c.bf16 %v1643_v24, %v1643_v24  ;;  %v592_v29 = vpack.c.bf16 %v1642_v25, %v1642_v25 }
 0x16a   : > { %v711_v30 = vunpack.c.l.b16 %v597_v26  ;;  %v710_v31 = vunpack.c.l.b16 %v596_v27  ;;  %v657_v32 = vunpack.c.l.b16 %v593_v28  ;;  %v656_v33 = vunpack.c.l.b16 %v592_v29 }
 0x16c   : > { %v712_v34 = vpack.c.b16 %v711_v30, %v710_v31  ;;  %v658_v35 = vpack.c.b16 %v657_v32, %v656_v33 }
 0x16d   : > { %v1646_v36 = vpop.permute.xlu0 %1645  ;;  %v632_v37 = vpop.permute.xlu1 %631 }
 0x16e   : > { %v1648_v38 = vunpack.i.h.bf16 %v1646_v36  ;;  %v1647_v39 = vunpack.i.l.bf16 %v1646_v36  ;;  %713 = vrot.lane.b32.xlu0 %v712_v34, %s1995_s27  ;;  %659 = vrot.lane.b32.xlu2 %v658_v35, %s1995_s27  ;;  %v638_v40 = vsel %vm633_vm1, %v632_v37, 0 }
 0x16f   : > { %647 = vmatpush.bf16.xpose.msra.mxu2 %v638_v40 }
 0x170   : > { %v595_v41 = vpack.c.bf16 %v1648_v38, %v1648_v38  ;;  %v594_v42 = vpack.c.bf16 %v1647_v39, %v1647_v39 }
 0x172   : > { %v684_v43 = vunpack.c.l.b16 %v595_v41  ;;  %v683_v44 = vunpack.c.l.b16 %v594_v42 }
 0x174   : > { %v685_v45 = vpack.c.b16 %v684_v43, %v683_v44 }
 0x176   : > { %686 = vrot.lane.b32.xlu2 %v685_v45, %s1995_s27  ;;  %1479 = vmatmul.msk.bf16.vlgmr.msra.gmra.mxu2 %vm633_vm1, %v630_v19 }
 0x177   : > { %853 = vmatpush.bf16.msrb.mxu2 %v841_v11 }
 0x1c8   : > { %v660_v49 = vpop.permute.xlu2 %659 }
 0x1c9   : > { %v665_v50 = vsel %vm633_vm1, %v660_v49, 0 }
 0x1ca   : > { %674 = vmatpush.bf16.xpose.msra.mxu3 %v665_v50 }
 0x1d0   : > { %v687_v51 = vpop.permute.xlu2 %686 }
 0x1d1   : > { %1480 = vmatmul.msk.bf16.vlgmr.msra.gmra.mxu3 %vm633_vm1, %v658_v35  ;;  %v692_v52 = vsel %vm633_vm1, %v687_v51, 0 }
 0x1d2   : > { %701 = vmatpush.bf16.xpose.msrb.mxu0 %v692_v52 }
 0x1d9   : > { %1481 = vmatmul.msk.bf16.vlgmr.msrb.gmra.mxu0 %vm633_vm1, %v685_v45 }
 0x1e0   : > { %v714_v53 = vpop.permute.xlu0 %713 }
 0x1e1   : > { %v719_v54 = vsel %vm633_vm1, %v714_v53, 0 }
 0x1e2   : > { %728 = vmatpush.bf16.xpose.msrb.mxu1 %v719_v54 }
 0x1e9   : > { %1482 = vmatmul.msk.bf16.vlgmr.msrb.gmra.mxu1 %vm633_vm1, %v712_v34 }
 0x1f9   : > { %v649_v56 = vpop.f32.mrf.mxu2 }
 0x1fa   : > { %v650_v57 = vadd.f32 %v649_v56, %v488_v55 }
 0x1fc   : > { %v736_v58 = vsel %vm735_vm2, %v650_v57, -inf }
 0x1fd   : > { %737 = vmax.xlane.f32.xlu1 %v736_v58 }
 0x201   : > { %v651_v60 = vpop.f32.mrf.mxu2 }
 0x202   : > { %v652_v61 = vadd.f32 %v651_v60, %v489_v59 }
 0x204   : > { %v739_v62 = vsel %vm735_vm2, %v652_v61, -inf }
 0x205   : > { %740 = vmax.xlane.f32.xlu2 %v739_v62 }
 0x254   : > { %v676_v12 = vpop.f32.mrf.mxu3 }
 0x255   : > { %v677_v13 = vadd.f32 %v676_v12, %v488_v55 }
 0x256   : > { %v703_v14 = vpop.f32.mrf.mxu0 }
 0x257   : > { %v704_v15 = vadd.f32 %v703_v14, %v488_v55  ;;  %v742_v16 = vsel %vm735_vm2, %v677_v13, -inf }
 0x258   : > { %743 = vmax.xlane.f32.xlu0 %v742_v16 }
 0x259   : > { %v748_v17 = vsel %vm735_vm2, %v704_v15, -inf }
 0x25a   : > { %749 = vmax.xlane.f32.xlu1 %v748_v17 }
 0x25c   : > { %v678_v18 = vpop.f32.mrf.mxu3 }
 0x25d   : > { %v679_v19 = vadd.f32 %v678_v18, %v489_v59 }
 0x25e   : > { %v705_v21 = vpop.f32.mrf.mxu0 }
 0x25f   : > { %v745_v20 = vsel %vm735_vm2, %v679_v19, -inf  ;;  %v706_v22 = vadd.f32 %v705_v21, %v489_v59 }
 0x260   : > { %746 = vmax.xlane.f32.xlu2 %v745_v20 }
 0x261   : > { %v751_v25 = vsel %vm735_vm2, %v706_v22, -inf }
 0x266   : > { %v730_v23 = vpop.f32.mrf.mxu1 }
 0x267   : > { %v731_v24 = vadd.f32 %v730_v23, %v488_v55 }
 0x268   : > { %752 = vmax.xlane.f32.xlu2 %v751_v25 }
 0x269   : > { %v754_v26 = vsel %vm735_vm2, %v731_v24, -inf }
 0x26a   : > { %755 = vmax.xlane.f32.xlu0 %v754_v26 }
 0x26e   : > { %v732_v27 = vpop.f32.mrf.mxu1 }
 0x26f   : > { %v733_v28 = vadd.f32 %v732_v27, %v489_v59 }
 0x270   : > { %v738_v29 = vpop.xlane.xlu1 %737 }
 0x271   : > { %v760_v30 = vsub.f32 %v650_v57, %v738_v29  ;;  %v757_v31 = vsel %vm735_vm2, %v733_v28, -inf }
 0x272   : > { %758 = vmax.xlane.f32.xlu1 %v757_v31 }
 0x273   : > { %v768_v32 = vmul.f32 1.442695, %v760_v30 }
 0x275   : > { %1678 = vpow2.f32 %v768_v32 }
 0x278   : > { %v741_v35 = vpop.xlane.xlu2 %740 }
 0x279   : > { %v761_v36 = vsub.f32 %v652_v61, %v741_v35 }
 0x27b   : > { %v2273_v33 = vpop.eup %1678  ;;  %v770_v37 = vmul.f32 1.442695, %v761_v36 }
 0x27c   : > { %v784_v34 = vsel %vm735_vm2, %v2273_v33, 0.0 }
 0x27d   : > { %785 = vadd.xlane.f32.xlu2 %v784_v34  ;;  %1680 = vpow2.f32 %v770_v37 }
 0x27e   : > { %1655 = vrot.lane.b32.xlu0 %v2265_v8, %s1993_s26 }
 0x283   : > { %v2279_v38 = vpop.eup %1680 }
 0x284   : > { %v787_v39 = vsel %vm735_vm2, %v2279_v38, 0.0 }
 0x2a8   : > { %788 = vadd.xlane.f32.xlu0 %v787_v39 }
 0x2bc   : > { %1665 = vrot.lane.b32.xlu0 %v2265_v8, %s1992_s19  ;;  %s1291_s19 = sshll.u32 %s1288_s29, 4  ;;  %s1292_s19 = int_to_ptr.hbm [resolvable:$true] %s1291_s19 }
 0x2bd   : > { %s1914_s26 = sshra.s32 %s1292_s19, 4  ;;  %s1915_s26 = int_to_ptr.hbm [resolvable:$true] %s1914_s26 }
 0x2be   : > { %p1921_p10 = scmp.lt.s32.totalorder %s1915_s26, %s2409_s9 }
 0x2cb   : > { %v744_v40 = vpop.xlane.xlu0 %743 }
 0x2cc   : > { %v762_v43 = vsub.f32 %v677_v13, %v744_v40 }
 0x2cd   : > { %v750_v41 = vpop.xlane.xlu1 %749 }
 0x2ce   : > { %v764_v42 = vsub.f32 %v704_v15, %v750_v41  ;;  %v772_v45 = vmul.f32 1.442695, %v762_v43 }
 0x2d0   : > { %v776_v44 = vmul.f32 1.442695, %v764_v42 }
 0x2d2   : > { %1682 = vpow2.f32 %v776_v44 }
 0x2d3   : > { %v747_v46 = vpop.xlane.xlu2 %746  ;;  %1684 = vpow2.f32 %v772_v45 }
 0x2d4   : > { %v763_v47 = vsub.f32 %v679_v19, %v747_v46 }
 0x2d6   : > { %v774_v48 = vmul.f32 1.442695, %v763_v47 }
 0x2d8   : > { %v2285_v49 = vpop.eup %1682  ;;  %1686 = vpow2.f32 %v774_v48 }
 0x2d9   : > { %v796_v50 = vsel %vm735_vm2, %v2285_v49, 0.0  ;;  %v2289_v53 = vpop.eup %1684 }
 0x2da   : > { %797 = vadd.xlane.f32.xlu1 %v796_v50  ;;  %v790_v60 = vsel %vm735_vm2, %v2289_v53, 0.0 }
 0x2db   : > { %v753_v51 = vpop.xlane.xlu2 %752 }
 0x2dc   : > { %v765_v52 = vsub.f32 %v706_v22, %v753_v51 }
 0x2dd   : > { %v756_v54 = vpop.xlane.xlu0 %755 }
 0x2de   : > { %v1687_v55 = vpop.eup %1686  ;;  %v778_v56 = vmul.f32 1.442695, %v765_v52  ;;  %v766_v57 = vsub.f32 %v731_v24, %v756_v54 }
 0x2df   : > { %v793_v58 = vsel %vm735_vm2, %v1687_v55, 0.0 }
 0x2e0   : > { %1688 = vpow2.f32 %v778_v56  ;;  %v780_v59 = vmul.f32 1.442695, %v766_v57  ;;  %794 = vadd.xlane.f32.xlu2 %v793_v58 }
 0x2e2   : > { %1690 = vpow2.f32 %v780_v59  ;;  %791 = vadd.xlane.f32.xlu1 %v790_v60 }
 0x2e5   : > { %v759_v61 = vpop.xlane.xlu1 %758 }
 0x2e6   : > { %v2294_v62 = vpop.eup %1688  ;;  %v767_v63 = vsub.f32 %v733_v28, %v759_v61 }
 0x2e7   : > { %v799_v0 = vsel %vm735_vm2, %v2294_v62, 0.0 }
 0x2e8   : > { %v2298_v3 = vpop.eup %1690  ;;  %v782_v4 = vmul.f32 1.442695, %v767_v63  ;;  %800 = vadd.xlane.f32.xlu2 %v799_v0 }
 0x2e9   : > { %v802_v5 = vsel %vm735_vm2, %v2298_v3, 0.0 }
 0x2ea   : > { %1692 = vpow2.f32 %v782_v4  ;;  %803 = vadd.xlane.f32.xlu1 %v802_v5 }
 0x2f0   : > { %v1693_v6 = vpop.eup %1692  ;;  %v1656_v7 = vpop.permute.xlu0 %1655 }
 0x2f1   : > { %v1658_v9 = vunpack.i.h.bf16 %v1656_v7  ;;  %v1657_v10 = vunpack.i.l.bf16 %v1656_v7  ;;  %v805_v11 = vsel %vm735_vm2, %v1693_v6, 0.0  ;;  %v786_v17 = vpop.xlane.xlu2 %785 }
 0x2f2   : > { %806 = vadd.xlane.f32.xlu2 %v805_v11  ;;  %1694 = vrcp.f32 %v786_v17 }
 0x2f3   : > { %v621_v12 = vpack.c.bf16 %v1658_v9, %v1658_v9  ;;  %v620_v13 = vpack.c.bf16 %v1657_v10, %v1657_v10 }
 0x2f5   : > { %v868_v14 = vunpack.c.l.b16 %v621_v12  ;;  %v867_v15 = vunpack.c.l.b16 %v620_v13 }
 0x2f7   : > { %v869_v16 = vpack.c.b16 %v868_v14, %v867_v15 }
 0x2f8   : > { %v1695_v19 = vpop.eup %1694 }
 0x2f9   : > { %881 = vmatpush.bf16.msrb.mxu3 %v869_v16  ;;  %v816_v20 = vmul.f32 %v1695_v19, %v2273_v33 }
 0x2fb   : > { %v824_v22 = vpack.c.bf16 %v816_v20, %v816_v20 }
 0x2fd   : > { %v834_v25 = vunpack.c.l.b16 %v824_v22 }
 0x303   : > { %1660 = vrot.lane.b32.xlu1 %v2265_v8, %s1994_s17  ;;  %s1916_s17 = scalar_lea.hbm %s1915_s26, 16 }
 0x304   : > { %p1917_p1 = scmp.ne.s32.totalorder %s1915_s26, %s1916_s17  ;;  %p1922_p2 = scmp.lt.s32.totalorder %s1920_s1, %s1916_s17 }
 0x306   : > { %p1918_p8 = pnand %p1917_p1, %p2139_p5  ;;  %p1923_p11 = por %p1922_p2, %p1921_p10 }
 0x308   : > { %p1919_p9 = pneg %p1918_p8 }
 0x30a   : > { %p1924_p12 = pnand %p1923_p11, %p1919_p9 }
 0x31b   : > { %v789_v18 = vpop.xlane.xlu0 %788 }
 0x31c   : > { %1696 = vrcp.f32 %v789_v18 }
 0x322   : > { %v1697_v21 = vpop.eup %1696 }
 0x323   : > { %v817_v23 = vmul.f32 %v1697_v21, %v2279_v38 }
 0x325   : > { %v825_v24 = vpack.c.bf16 %v817_v23, %v817_v23 }
 0x327   : > { %v835_v26 = vunpack.c.l.b16 %v825_v24  ;;  %v953_v24 = vld [vmem:[#allocation8 + $0x4] sm:$0xf] }
 0x329   : > { %v836_v27 = vpack.c.b16 %v835_v26, %v834_v25  ;;  %v991_v25 = vsel %vm964_vm3, %v953_v24, 0  ;;  %v955_v26 = vld [vmem:[#allocation8 + $0xc] sm:$0xf] }
 0x32a   : > { %1000 = vmatpush.bf16.msra.mxu3 %v991_v25 }
 0x32b   : > { %1483 = vmatmul.msk.bf16.vlgmr.msrb.gmra.mxu2 %vm735_vm2, %v836_v27  ;;  %v1041_v27 = vsel %vm964_vm3, %v955_v26, 0 }
 0x32e   : > { %v1666_v28 = vpop.permute.xlu0 %1665 }
 0x32f   : > { %v1668_v29 = vunpack.i.h.bf16 %v1666_v28  ;;  %v1667_v8 = vunpack.i.l.bf16 %v1666_v28 }
 0x331   : > { %v625_v30 = vpack.c.bf16 %v1668_v29, %v1668_v29  ;;  %v624_v31 = vpack.c.bf16 %v1667_v8, %v1667_v8  ;;  %v954_v29 = vld [vmem:[#allocation8 + $0x8] sm:$0xf] }
 0x332   : > { %v1016_v8 = vsel %vm964_vm3, %v954_v29, 0 }
 0x333   : > { %v924_v32 = vunpack.c.l.b16 %v625_v30  ;;  %v923_v34 = vunpack.c.l.b16 %v624_v31 }
 0x335   : > { %v925_v35 = vpack.c.b16 %v924_v32, %v923_v34 }
 0x337   : > { %937 = vmatpush.bf16.msra.mxu1 %v925_v35 }
 0x33b   : > { %1050 = vmatpush.bf16.msrb.mxu1 %v1041_v27 }
 0x34d   : > { %v798_v33 = vpop.xlane.xlu1 %797 }
 0x353   : > { %v795_v36 = vpop.xlane.xlu2 %794 }
 0x354   : > { %1698 = vrcp.f32 %v795_v36 }
 0x355   : > { %v792_v37 = vpop.xlane.xlu1 %791 }
 0x356   : > { %1700 = vrcp.f32 %v792_v37 }
 0x35a   : > { %v1699_v38 = vpop.eup %1698 }
 0x35b   : > { %v819_v39 = vmul.f32 %v1699_v38, %v1687_v55  ;;  %v801_v43 = vpop.xlane.xlu2 %800 }
 0x35c   : > { %v1701_v40 = vpop.eup %1700 }
 0x35d   : > { %v827_v41 = vpack.c.bf16 %v819_v39, %v819_v39  ;;  %v818_v42 = vmul.f32 %v1701_v40, %v2289_v53  ;;  %v804_v44 = vpop.xlane.xlu1 %803 }
 0x35e   : > { %1702 = vrcp.f32 %v804_v44 }
 0x35f   : > { %v826_v45 = vpack.c.bf16 %v818_v42, %v818_v42  ;;  %v863_v46 = vunpack.c.l.b16 %v827_v41 }
 0x361   : > { %v862_v47 = vunpack.c.l.b16 %v826_v45 }
 0x363   : > { %v864_v48 = vpack.c.b16 %v863_v46, %v862_v47 }
 0x364   : > { %v1703_v51 = vpop.eup %1702 }
 0x365   : > { %v807_v50 = vpop.xlane.xlu2 %806  ;;  %1484 = vmatmul.msk.bf16.vlgmr.msrb.gmra.mxu3 %vm735_vm2, %v864_v48  ;;  %v822_v52 = vmul.f32 %v1703_v51, %v2298_v3 }
 0x366   : > { %1704 = vrcp.f32 %v807_v50 }
 0x367   : > { %1706 = vrcp.f32 %v801_v43  ;;  %v830_v55 = vpack.c.bf16 %v822_v52, %v822_v52 }
 0x368   : > { %1708 = vrcp.f32 %v798_v33 }
 0x369   : > { %v918_v58 = vunpack.c.l.b16 %v830_v55 }
 0x36c   : > { %v1705_v54 = vpop.eup %1704 }
 0x36d   : > { %v823_v56 = vmul.f32 %v1705_v54, %v1693_v6  ;;  %v1707_v57 = vpop.eup %1706 }
 0x36e   : > { %v1709_v60 = vpop.eup %1708  ;;  %v821_v61 = vmul.f32 %v1707_v57, %v2294_v62  ;;  %v952_v62 = vld [vmem:[#allocation8] sm:$0xf] }
 0x36f   : > { %v831_v53 = vpack.c.bf16 %v823_v56, %v823_v56  ;;  %v820_v0 = vmul.f32 %v1709_v60, %v2285_v49  ;;  %v966_v49 = vsel %vm964_vm3, %v952_v62, 0 }
 0x370   : > { %v829_v7 = vpack.c.bf16 %v821_v61, %v821_v61  ;;  %975 = vmatpush.bf16.msra.mxu2 %v966_v49  ;;  %v1671_v61 = vld [vmem:[#allocation11 + $0x2] ss:$0 sm:$0xff] }
 0x371   : > { %v919_v59 = vunpack.c.l.b16 %v831_v53  ;;  %v828_v11 = vpack.c.bf16 %v820_v0, %v820_v0 }
 0x372   : > { %v891_v13 = vunpack.c.l.b16 %v829_v7 }
 0x373   : > { %v920_v63 = vpack.c.b16 %v919_v59, %v918_v58  ;;  %v890_v15 = vunpack.c.l.b16 %v828_v11 }
 0x375   : > { %1486 = vmatmul.msk.bf16.vlgmr.msra.gmra.mxu1 %vm735_vm2, %v920_v63  ;;  %v1661_v4 = vpop.permute.xlu1 %1660  ;;  %v892_v16 = vpack.c.b16 %v891_v13, %v890_v15 }
 0x376   : > { %v1663_v5 = vunpack.i.h.bf16 %v1661_v4  ;;  %v1662_v3 = vunpack.i.l.bf16 %v1661_v4 }
 0x378   : > { %v623_v9 = vpack.c.bf16 %v1663_v5, %v1663_v5  ;;  %v622_v10 = vpack.c.bf16 %v1662_v3, %v1662_v3 }
 0x37a   : > { %v896_v6 = vunpack.c.l.b16 %v623_v9  ;;  %v895_v12 = vunpack.c.l.b16 %v622_v10 }
 0x37c   : > { %v897_v14 = vpack.c.b16 %v896_v6, %v895_v12 }
 0x37e   : > { %909 = vmatpush.bf16.msra.mxu0 %v897_v14 }
 0x381   : > { %1485 = vmatmul.msk.bf16.vlgmr.msra.gmra.mxu0 %vm735_vm2, %v892_v16 }
 0x382   : > { %1025 = vmatpush.bf16.msrb.mxu0 %v1016_v8 }
 0x3ae   : > { %v855_v17 = vpop.f32.mrf.mxu2 }
 0x3af   : > { %v944_v18 = vpack.c.bf16 %v855_v17, %v855_v17 }
 0x3b1   : > { %v958_v21 = vunpack.c.l.b16 %v944_v18  ;;  %v1996_v18 = vmov 32.0  }
 0x3b2   : > { %1710 = vrcp.f32 %v1996_v18 }
 0x3b6   : > { %v857_v19 = vpop.f32.mrf.mxu2 }
 0x3b7   : > { %v945_v20 = vpack.c.bf16 %v857_v19, %v857_v19 }
 0x3b8   : > { %v1711_v19 = vpop.eup %1710 }
 0x3b9   : > { %v959_v22 = vunpack.c.l.b16 %v945_v20  ;;  %v1083_v20 = vmul.f32 32.0, %v1711_v19  ;;  %vm1087_vm4 = vweird.f32 %v1711_v19 }
 0x3bb   : > { %v960_v23 = vpack.c.b16 %v959_v22, %v958_v21 }
 0x3bd   : > { %1487 = vmatmul.msk.bf16.vlgmr.msra.gmra.mxu2 %vm633_vm1, %v960_v23 }
 0x3e8   : > { %v883_v28 = vpop.f32.mrf.mxu3 }
 0x3e9   : > { %v946_v30 = vpack.c.bf16 %v883_v28, %v883_v28 }
 0x3eb   : > { %v984_v35 = vunpack.c.l.b16 %v946_v30 }
 0x3f0   : > { %v885_v31 = vpop.f32.mrf.mxu3 }
 0x3f1   : > { %v947_v32 = vpack.c.bf16 %v885_v31, %v885_v31 }
 0x3f2   : > { %v939_v34 = vpop.f32.mrf.mxu1 }
 0x3f3   : > { %v985_v33 = vunpack.c.l.b16 %v947_v32  ;;  %v950_v37 = vpack.c.bf16 %v939_v34, %v939_v34  ;;  %v1530_v32 = vld [vmem:[#allocation10 + $0x8] sm:$0xff] }
 0x3f4   : > { %1160 = vmatpush.bf16.msrb.mxu2 %v1530_v32 }
 0x3f5   : > { %v986_v36 = vpack.c.b16 %v985_v33, %v984_v35  ;;  %v1034_v40 = vunpack.c.l.b16 %v950_v37  ;;  %v1529_v33 = vld [vmem:[#allocation10] sm:$0xff] }
 0x3f7   : > { %1488 = vmatmul.msk.bf16.vlgmr.msra.gmra.mxu3 %vm633_vm1, %v986_v36 }
 0x3f8   : > { %1161 = vmatpush.bf16.msrb.mxu2 %v1529_v33 }
 0x3fa   : > { %v941_v38 = vpop.f32.mrf.mxu1 }
 0x3fb   : > { %v951_v39 = vpack.c.bf16 %v941_v38, %v941_v38 }
 0x3fd   : > { %v1035_v41 = vunpack.c.l.b16 %v951_v39 }
 0x3fe   : > { %v911_v42 = vpop.f32.mrf.mxu0 }
 0x3ff   : > { %v1036_v43 = vpack.c.b16 %v1035_v41, %v1034_v40  ;;  %v948_v44 = vpack.c.bf16 %v911_v42, %v911_v42 }
 0x401   : > { %1490 = vmatmul.msk.bf16.vlgmr.msrb.gmra.mxu1 %vm633_vm1, %v1036_v43  ;;  %v1009_v47 = vunpack.c.l.b16 %v948_v44 }
 0x406   : > { %v913_v45 = vpop.f32.mrf.mxu0 }
 0x407   : > { %v949_v46 = vpack.c.bf16 %v913_v45, %v913_v45 }
 0x409   : > { %v1010_v48 = vunpack.c.l.b16 %v949_v46 }
 0x40b   : > { %v1011_v50 = vpack.c.b16 %v1010_v48, %v1009_v47 }
 0x40d   : > { %1489 = vmatmul.msk.bf16.vlgmr.msrb.gmra.mxu0 %vm633_vm1, %v1011_v50 }
 0x440   : > { %v977_v52 = vpop.f32.mrf.mxu2 }
 0x441   : > { %v1057_v56 = vsel %vm517_vm0, %v977_v52, 0.0 }
 0x448   : > { %v979_v0 = vpop.f32.mrf.mxu2 }
 0x449   : > { %v1064_v7 = vsel %vm517_vm0, %v979_v0, 0.0 }
 0x47a   : > { %v1002_v51 = vpop.f32.mrf.mxu3 }
 0x47b   : > { %v1058_v54 = vsel %vm517_vm0, %v1002_v51, 0.0 }
 0x47c   : > { %v1059_v53 = vadd.f32 %v1058_v54, %v1057_v56  ;;  %v1672_v54 = vld [vmem:[#allocation11 + $0x3] ss:$0 sm:$0xff] }
 0x47e   : > { %v1052_v55 = vpop.f32.mrf.mxu1 }
 0x47f   : > { %v1062_v63 = vsel %vm517_vm0, %v1052_v55, 0.0 }
 0x482   : > { %v1004_v59 = vpop.f32.mrf.mxu3 }
 0x483   : > { %v1065_v5 = vsel %vm517_vm0, %v1004_v59, 0.0 }
 0x484   : > { %v1066_v9 = vadd.f32 %v1065_v5, %v1064_v7  ;;  %v1533_v5 = vld [vmem:[%s2407_s7 + $0x10] sm:$0xff]  ;;  %v1531_v7 = vld [vmem:[%s2407_s7] sm:$0xff] }
 0x486   : > { %v1054_v10 = vpop.f32.mrf.mxu1 }
 0x487   : > { %v1069_v15 = vsel %vm517_vm0, %v1054_v10, 0.0  ;;  %v1674_v10 = vld [vmem:[#allocation11 + $0x5] ss:$0 sm:$0xff] }
 0x48a   : > { %v1027_v57 = vpop.f32.mrf.mxu0 }
 0x48b   : > { %v1060_v58 = vsel %vm517_vm0, %v1027_v57, 0.0  ;;  %v1673_v57 = vld [vmem:[#allocation11 + $0x4] ss:$0 sm:$0xff] }
 0x48c   : > { %v1061_v60 = vadd.f32 %v1060_v58, %v1059_v53 }
 0x48e   : > { %v1063_v4 = vadd.f32 %v1062_v63, %v1061_v60 }
 0x490   : > { %v1072_v3 = vadd.f32 %v1671_v61, %v1063_v4  ;;  %v1534_v4 = vld [vmem:[%s2407_s7 + $0x18] sm:$0xff] }
 0x491   : > { %1212 = vmatpush.bf16.msrb.mxu3 %v1534_v4 }
 0x492   : > { %v1029_v11 = vpop.f32.mrf.mxu0  ;;  %v1074_v6 = vadd.f32 %v1072_v3, %v2231_v1  ;;  %v1084_v1 = vsub.f32 1.0, %v1083_v20  ;;  %v1532_v3 = vld [vmem:[%s2407_s7 + $0x8] sm:$0xff] }
 0x493   : > { %v1067_v12 = vsel %vm517_vm0, %v1029_v11, 0.0 }
 0x494   : > { %v1068_v13 = vadd.f32 %v1067_v12, %v1066_v9  ;;  %v1076_v14 = vsel %vm517_vm0, %v1074_v6, 0.0  ;;  %v1085_v21 = vmul.f32 %v1711_v19, %v1084_v1 }
 0x495   : > { %1077 = vadd.xlane.f32.xlu2 %v1076_v14  ;;  %1213 = vmatpush.bf16.msrb.mxu3 %v1533_v5 }
 0x496   : > { %v1070_v16 = vadd.f32 %v1069_v15, %v1068_v13  ;;  %v1086_v22 = vadd.f32 %v1711_v19, %v1085_v21 }
 0x498   : > { %v1073_v62 = vadd.f32 %v1671_v61, %v1070_v16  ;;  %v2335_v23 = vsel %vm1087_vm4, %v1711_v19, %v1086_v22  ;;  %v1675_v16 = vld [vmem:[#allocation11 + $0x6] ss:$0 sm:$0xff] }
 0x499   : > { %1214 = vmatpush.bf16.msrb.mxu3 %v1532_v3 }
 0x49a   : > { %v1075_v49 = vadd.f32 %v1073_v62, %v2233_v2 }
 0x49c   : > { %v1079_v17 = vsel %vm517_vm0, %v1075_v49, 0.0 }
 0x49d   : > { %1080 = vadd.xlane.f32.xlu0 %v1079_v17  ;;  %1215 = vmatpush.bf16.msrb.mxu3 %v1531_v7 }
 0x508   : > { %v1078_v24 = vpop.xlane.xlu2 %1077 }
 0x509   : > { %v1089_v25 = vmul.f32 %v2335_v23, %v1078_v24 }
 0x50b   : > { %v1091_v26 = vsub.f32 %v1074_v6, %v1089_v25 }
 0x50d   : > { %v1093_v27 = vmul.f32 %v1091_v26, %v1091_v26 }
 0x50f   : > { %v1095_v2 = vsel %vm517_vm0, %v1093_v27, 0.0 }
 0x510   : > { %1096 = vadd.xlane.f32.xlu2 %v1095_v2  ;;  %v1081_v28 = vpop.xlane.xlu0 %1080 }
 0x511   : > { %v1090_v29 = vmul.f32 %v2335_v23, %v1081_v28 }
 0x513   : > { %v1092_v8 = vsub.f32 %v1075_v49, %v1090_v29 }
 0x515   : > { %v1094_v30 = vmul.f32 %v1092_v8, %v1092_v8 }
 0x517   : > { %v1098_v31 = vsel %vm517_vm0, %v1094_v30, 0.0 }
 0x518   : > { %1099 = vadd.xlane.f32.xlu2 %v1098_v31 }
 0x583   : > { %v1097_v34 = vpop.xlane.xlu2 %1096 }
 0x584   : > { %v1101_v35 = vmul.f32 %v1097_v34, %v2335_v23 }
 0x586   : > { %v1103_v36 = vadd.f32 1e-05, %v1101_v35 }
 0x588   : > { %1712 = vrsqrt.f32 %v1103_v36  ;;  %vm1111_vm6 = vweird.f32 %v1103_v36 }
 0x58b   : > { %v1100_v37 = vpop.xlane.xlu2 %1099 }
 0x58c   : > { %v1102_v38 = vmul.f32 %v1100_v37, %v2335_v23 }
 0x58e   : > { %v1713_v39 = vpop.eup %1712  ;;  %v1104_v40 = vadd.f32 1e-05, %v1102_v38 }
 0x58f   : > { %v1106_v41 = vmul.f32 %v1713_v39, %v1103_v36  ;;  %vm1112_vm5 = vweird.f32 %v1713_v39 }
 0x590   : > { %1714 = vrsqrt.f32 %v1104_v40  ;;  %vm1113_vm7 = vmor %vm1111_vm6, %vm1112_vm5  ;;  %vm1121_vm9 = vweird.f32 %v1104_v40 }
 0x591   : > { %v1107_v42 = vmul.f32 %v1713_v39, %v1106_v41 }
 0x593   : > { %v1108_v43 = vmul.f32 0.5, %v1107_v42 }
 0x595   : > { %v1109_v44 = vsub.f32 1.5, %v1108_v43 }
 0x596   : > { %v1715_v45 = vpop.eup %1714 }
 0x597   : > { %v1110_v46 = vmul.f32 %v1713_v39, %v1109_v44  ;;  %v1116_v47 = vmul.f32 %v1715_v45, %v1104_v40  ;;  %vm1122_vm8 = vweird.f32 %v1715_v45 }
 0x598   : > { %vm1123_vm10 = vmor %vm1121_vm9, %vm1122_vm8 }
 0x599   : > { %v1117_v48 = vmul.f32 %v1715_v45, %v1116_v47  ;;  %v1114_v50 = vsel %vm1113_vm7, %v1713_v39, %v1110_v46 }
 0x59a   : > { %v1125_v55 = vmul.f32 %v1114_v50, %v1091_v26 }
 0x59b   : > { %v1118_v51 = vmul.f32 0.5, %v1117_v48  ;;  %v1677_v48 = vld [vmem:[#allocation11 + $0x8] ss:$0 sm:$0xff] }
 0x59c   : > { %v1128_v58 = vmul.f32 %v1672_v54, %v1125_v55 }
 0x59d   : > { %v1119_v52 = vsub.f32 1.5, %v1118_v51 }
 0x59e   : > { %v1131_v61 = vadd.f32 %v1673_v57, %v1128_v58 }
 0x59f   : > { %v1120_v56 = vmul.f32 %v1715_v45, %v1119_v52 }
 0x5a1   : > { %v1124_v53 = vsel %vm1123_vm10, %v1715_v45, %v1120_v56  ;;  %v1676_v45 = vld [vmem:[#allocation11 + $0x7] ss:$0 sm:$0xff] }
 0x5a2   : > { %v1126_v59 = vmul.f32 %v1124_v53, %v1092_v8 }
 0x5a4   : > { %v1129_v60 = vmul.f32 %v1672_v54, %v1126_v59 }
 0x5a6   : > { %v1132_v63 = vadd.f32 %v1673_v57, %v1129_v60 }
 0x5a8   : > { %v1133_v0 = vpack.c.bf16 %v1132_v63, %v1131_v61 }
 0x5aa   : > { %1499 = vmatmul.msk.bf16.vlgmr.msrb.gmra.mxu2 %vm517_vm0, %v1133_v0 }
 0x62d   : > { %v1163_v9 = vpop.f32.mrf.mxu2 }
 0x62e   : > { %v1164_v11 = vadd.f32 %v1674_v10, %v1163_v9 }
 0x630   : > { %v1168_v13 = vmax.f32 %v1164_v11, 0.0 }
 0x635   : > { %v1165_v6 = vpop.f32.mrf.mxu2 }
 0x636   : > { %v1166_v12 = vadd.f32 %v1674_v10, %v1165_v6 }
 0x638   : > { %v1169_v14 = vmax.f32 %v1166_v12, 0.0 }
 0x63a   : > { %v1170_v15 = vpack.c.bf16 %v1169_v14, %v1168_v13 }
 0x63c   : > { %1516 = vmatmul.msk.bf16.vlgmr.msrb.gmra.mxu3 %vm1204_vm11, %v1170_v15 }
 0x6bf   : > { %v1217_v62 = vpop.f32.mrf.mxu3 }
 0x6c0   : > { %v1218_v49 = vadd.f32 %v1675_v16, %v1217_v62 }
 0x6c2   : > { %v1222_v17 = vadd.f32 %v1218_v49, %v1131_v61 }
 0x6c4   : > { %v1224_v18 = vsel %vm517_vm0, %v1222_v17, 0.0 }
 0x6c5   : > { %1225 = vadd.xlane.f32.xlu1 %v1224_v18 }
 0x6c7   : > { %v1219_v19 = vpop.f32.mrf.mxu3 }
 0x6c8   : > { %v1220_v20 = vadd.f32 %v1675_v16, %v1219_v19 }
 0x6ca   : > { %v1223_v1 = vadd.f32 %v1220_v20, %v1132_v63 }
 0x6cc   : > { %v1227_v21 = vsel %vm517_vm0, %v1223_v1, 0.0 }
 0x6cd   : > { %1228 = vadd.xlane.f32.xlu2 %v1227_v21 }
 0x738   : > { %v1226_v22 = vpop.xlane.xlu1 %1225 }
 0x739   : > { %v1230_v24 = vmul.f32 %v1226_v22, %v2335_v23 }
 0x73b   : > { %v1232_v25 = vsub.f32 %v1222_v17, %v1230_v24 }
 0x73d   : > { %v1234_v26 = vmul.f32 %v1232_v25, %v1232_v25 }
 0x73f   : > { %v1236_v27 = vsel %vm517_vm0, %v1234_v26, 0.0 }
 0x740   : > { %v1229_v2 = vpop.xlane.xlu2 %1228  ;;  %1237 = vadd.xlane.f32.xlu2 %v1236_v27 }
 0x741   : > { %v1231_v28 = vmul.f32 %v1229_v2, %v2335_v23 }
 0x743   : > { %v1233_v29 = vsub.f32 %v1223_v1, %v1231_v28 }
 0x745   : > { %v1235_v8 = vmul.f32 %v1233_v29, %v1233_v29 }
 0x747   : > { %v1239_v30 = vsel %vm517_vm0, %v1235_v8, 0.0 }
 0x748   : > { %1240 = vadd.xlane.f32.xlu2 %v1239_v30 }
 0x7b3   : > { %v1238_v31 = vpop.xlane.xlu2 %1237 }
 0x7b4   : > { %v1242_v32 = vmul.f32 %v1238_v31, %v2335_v23 }
 0x7b6   : > { %v1244_v34 = vadd.f32 1e-05, %v1242_v32 }
 0x7b8   : > { %1716 = vrsqrt.f32 %v1244_v34  ;;  %vm1252_vm13 = vweird.f32 %v1244_v34 }
 0x7bb   : > { %v1241_v35 = vpop.xlane.xlu2 %1240 }
 0x7bc   : > { %v1243_v33 = vmul.f32 %v1241_v35, %v2335_v23 }
 0x7be   : > { %v1717_v36 = vpop.eup %1716  ;;  %v1245_v37 = vadd.f32 1e-05, %v1243_v33 }
 0x7bf   : > { %v1247_v38 = vmul.f32 %v1717_v36, %v1244_v34  ;;  %vm1253_vm12 = vweird.f32 %v1717_v36 }
 0x7c0   : > { %1718 = vrsqrt.f32 %v1245_v37  ;;  %vm1254_vm14 = vmor %vm1252_vm13, %vm1253_vm12  ;;  %vm1262_vm1 = vweird.f32 %v1245_v37 }
 0x7c1   : > { %v1248_v39 = vmul.f32 %v1717_v36, %v1247_v38 }
 0x7c3   : > { %v1249_v40 = vmul.f32 0.5, %v1248_v39 }
 0x7c5   : > { %v1250_v41 = vsub.f32 1.5, %v1249_v40 }
 0x7c6   : > { %v1719_v42 = vpop.eup %1718 }
 0x7c7   : > { %v1251_v43 = vmul.f32 %v1717_v36, %v1250_v41  ;;  %v1257_v44 = vmul.f32 %v1719_v42, %v1245_v37  ;;  %vm1263_vm15 = vweird.f32 %v1719_v42 }
 0x7c8   : > { %vm1264_vm2 = vmor %vm1262_vm1, %vm1263_vm15 }
 0x7c9   : > { %v1255_v46 = vsel %vm1254_vm14, %v1717_v36, %v1251_v43  ;;  %v1258_v47 = vmul.f32 %v1719_v42, %v1257_v44 }
 0x7ca   : > { %v1266_v23 = vmul.f32 %v1255_v46, %v1232_v25 }
 0x7cb   : > { %v1259_v50 = vmul.f32 0.5, %v1258_v47 }
 0x7cc   : > { %v1269_v51 = vmul.f32 %v1676_v45, %v1266_v23 }
 0x7cd   : > { %v1260_v52 = vsub.f32 1.5, %v1259_v50 }
 0x7ce   : > { %v1272_v54 = vadd.f32 %v1677_v48, %v1269_v51 }
 0x7cf   : > { %v1261_v55 = vmul.f32 %v1719_v42, %v1260_v52 }
 0x7d0   : > { %1274 = vst.msk [vmem:[%s475_s5] sm:$0xff] %vm517_vm0, %v1272_v54 }
 0x7d1   : > { %v1265_v56 = vsel %vm1264_vm2, %v1719_v42, %v1261_v55 }
 0x7d2   : > { %v1267_v53 = vmul.f32 %v1265_v56, %v1233_v29 }
 0x7d4   : > { %v1270_v57 = vmul.f32 %v1676_v45, %v1267_v53 }
 0x7d6   : > { %v1273_v58 = vadd.f32 %v1677_v48, %v1270_v57 }
 0x7d8   : > { %1275 = vst.msk [vmem:[%s475_s5 + $0x8] sm:$0xff] %vm517_vm0, %v1273_v58 }
 0x7d9   : > { %1927 = shalt.err (!%p1924_p12)
}
 0x7da   : > { %s1997_s21 = smov 128   ;;  %s1998_s20 = smov 8  }
 0x7db   : > { %1556 = dma.vmem_to_hbm [thread:$0]  (%p2139_p5), %s1290_s11, 256, %s1292_s19, %s1277_s13, %s1997_s21, %s1997_s21, %s1998_s20  }
 0x7dc PF: > { %s1306_s14 = sand.u32 1, %s1970_s30   ;;  %p2438_p13 = scmp.ge.s32.totalorder %s1982_s12, 2 }
 0x7dd   : > { %s1307_s15 = scalar_lea.sflag [#allocation4], %s1306_s14 }
 0x7de   : > { %p1579_p0 = pnand %p2438_p13, %p2084_p6 }
 0x7e0   : > { %p1580_p3 = pneg %p1579_p0 }
 0x7e2   : > { %1965 = dma.done.wait (%p1580_p3), %s1307_s15, 256  }
 0x7e3   : > { %1967 = vsyncadd (%p1580_p3), %s1307_s15, 4294967040  ;;  %s2439_s12 = sld [smem:[#allocation21_spill]]  ;;  %s2442_s30 = smov %s1974_s10 }
 0x7e4   : > { %s2440_s25 = sld [smem:[#allocation20_spill]] }
 0x7e5   : > { %s2441_s11 = sld [smem:[#allocation22_spill]] }
 0x7e9   : > { %p27_p7 = scmp.ge.s32.totalorder %s2439_s12, 4  }
 0x7ea   : > { %s2443_s10 = smov %s2440_s25 }
 0x7eb   :  { %29 = sbr.rel (!%p27_p7) target bundleno = 15 (0xf), region = 133 }
 0x7f0   :  { %1313 = vsyncpa [#allocation3], 1 }
 0x7f1   :  { %1315 = vsyncpa [#allocation3 + $0x1], 1 }
 0x7f2   :  { %1316 = vsyncpa [#allocation6], 1 }
 0x7f3   :  { %1318 = vsyncpa [#allocation6 + $0x1], 1 }
 0x7f4   :  { %1319 = vsyncpa [#allocation9], 1 }
 0x7f5   :  { %1320 = vsyncpa [#allocation12], 1 }
 0x7f6   :  { %1321 = vsyncpa [#allocation4], 1 }
 0x7f7   :  { %1323 = vsyncpa [#allocation4 + $0x1], 1 }

</bundles_post_ra>
